<compile_context>
chip_gen: v7x
topology: tpu7x:2x2x1
jax: 0.10.0
libtpu: 0.0.40
codegen_flags: <defaults>
</compile_context>

<pallas_src>
import functools

import jax
import jax.numpy as jnp
import numpy as np
from jax import lax
from jax.experimental import pallas as pl
from jax.experimental.pallas import tpu as pltpu

_LANE = 128      # vreg lane width
_SUBLANE = 8     # f32 sublane count


def _ceil_to(x, m):
    return ((x + m - 1) // m) * m


def _make_encoder_kernel(T, Bp, Ep, Hp, L, return_sequence):
    """Fused stacked-LSTM kernel, one grid step per layer.

    Ref order:
      inputs : x_flat (T*Bp, Ep) bf16          [resident, constant block index]
               wih    (IN, 4Hp)  bf16          [per-layer streamed block]
               whh    (Hp, 4Hp)  bf16          [per-layer streamed block]
               bias   (1, 4Hp)   f32           [per-layer streamed block]
      outputs: hid (Bp, Hp) f32, cell (Bp, Hp) f32   [per-layer blocks]
               y (T*Bp, Hp) f32                       [only if return_sequence]
      scratch: seq_sc  VMEM f32  — layer-to-layer sequence (persists across layers)
               xproj_sc VMEM f32 — hoisted input projection for current layer
    Gate column order is pre-permuted to [i, f, o, g]; each gate block is Hp wide.
    """
    needs_seq = (L > 1) or return_sequence

    def kernel(*refs):
        if return_sequence:
            (x_ref, wih_ref, whh_ref, b_ref,
             hid_ref, cell_ref, y_ref, seq_sc, xproj_sc) = refs
        else:
            (x_ref, wih_ref, whh_ref, b_ref,
             hid_ref, cell_ref, seq_sc, xproj_sc) = refs
            y_ref = None

        layer = pl.program_id(0)

        # ---- Hoisted input projection: one big MXU matmul per layer, bias folded.
        def proj_from_x():
            xproj_sc[...] = (
                jnp.dot(x_ref[...], wih_ref[:Ep, :],
                        preferred_element_type=jnp.float32) + b_ref[...])

        def proj_from_seq():
            xproj_sc[...] = (
                jnp.dot(seq_sc[...].astype(jnp.bfloat16), wih_ref[:Hp, :],
                        preferred_element_type=jnp.float32) + b_ref[...])

        if L == 1:
            proj_from_x()
        else:
            pl.when(layer == 0)(proj_from_x)
            pl.when(layer > 0)(proj_from_seq)

        # ---- Serial recurrence: only the tiny (Bp,Hp)x(Hp,4Hp) h-matmul +
        #      lane-aligned elementwise math remain on the sequential path.
        def step(t, carry):
            h, c = carry
            row = pl.multiple_of(t * Bp, Bp)
            gates = xproj_sc[pl.ds(row, Bp), :] + jnp.dot(
                h.astype(jnp.bfloat16), whh_ref[...],
                preferred_element_type=jnp.float32)            # (Bp, 4Hp) f32
            sig = jax.nn.sigmoid(gates[:, :3 * Hp])            # [ i | f | o ]
            g = jnp.tanh(gates[:, 3 * Hp:])                    # g gate
            c = sig[:, Hp:2 * Hp] * c + sig[:, :Hp] * g
            h = sig[:, 2 * Hp:3 * Hp] * jnp.tanh(c)
            if needs_seq:
                seq_sc[pl.ds(row, Bp), :] = h
            return h, c

        h0 = jnp.zeros((Bp, Hp), jnp.float32)
        c0 = jnp.zeros((Bp, Hp), jnp.float32)
        h, c = lax.fori_loop(0, T, step, (h0, c0), unroll=True)

        hid_ref[...] = h
        cell_ref[...] = c

        if return_sequence:
            @pl.when(layer == L - 1)
            def _():
                y_ref[...] = seq_sc[...]     # one lane-dense (T*Bp, Hp) slab

        # TODO(synk): nn.LSTM inter-layer dropout is training-only; identity at eval.

    return kernel


def _encoder_lstm_pallas(x_flat, wih_all, whh_all, b_all, *, T, Bp,
                         return_sequence=False):
    """x_flat: (T*Bp, Ep) bf16.  Stacked weights: wih (L,IN,4Hp), whh (L,Hp,4Hp),
    b (L,1,4Hp).  Returns (hid (L,Bp,Hp), cell (L,Bp,Hp)[, y (T*Bp,Hp)]) in f32."""
    TBp, Ep = x_flat.shape
    L, IN, fourHp = wih_all.shape
    Hp = whh_all.shape[1]
    needs_seq = (L > 1) or return_sequence
    seq_rows = TBp if needs_seq else Bp

    out_shape = [jax.ShapeDtypeStruct((L, Bp, Hp), jnp.float32),
                 jax.ShapeDtypeStruct((L, Bp, Hp), jnp.float32)]
    out_specs = [pl.BlockSpec((None, Bp, Hp), lambda l: (l, 0, 0)),
                 pl.BlockSpec((None, Bp, Hp), lambda l: (l, 0, 0))]
    if return_sequence:
        out_shape.append(jax.ShapeDtypeStruct((TBp, Hp), jnp.float32))
        out_specs.append(pl.BlockSpec((TBp, Hp), lambda l: (0, 0)))

    in_specs = [
        pl.BlockSpec((TBp, Ep), lambda l: (0, 0)),              # x: resident
        pl.BlockSpec((None, IN, fourHp), lambda l: (l, 0, 0)),  # wih: streamed
        pl.BlockSpec((None, Hp, fourHp), lambda l: (l, 0, 0)),  # whh: streamed
        pl.BlockSpec((None, 1, fourHp), lambda l: (l, 0, 0)),   # bias: streamed
    ]

    # Explicit VMEM budget: double-buffered weight streams + resident activations.
    bf16, f32 = 2, 4
    stream = 2 * (IN * fourHp * bf16 + Hp * fourHp * bf16 + _SUBLANE * fourHp * f32)
    resident = TBp * Ep * bf16 + seq_rows * Hp * f32 + TBp * fourHp * f32
    outs = 2 * 2 * Bp * Hp * f32 + (TBp * Hp * f32 if return_sequence else 0)
    vmem_limit = int(min(max(2 * (stream + resident + outs), 32 * 1024 * 1024),
                         128 * 1024 * 1024))

    kernel = _make_encoder_kernel(T=T, Bp=Bp, Ep=Ep, Hp=Hp, L=L,
                                  return_sequence=return_sequence)

    return pl.pallas_call(
        kernel,
        out_shape=tuple(out_shape),
        grid=(L,),
        in_specs=in_specs,
        out_specs=tuple(out_specs),
        scratch_shapes=[pltpu.VMEM((seq_rows, Hp), jnp.float32),
                        pltpu.VMEM((TBp, fourHp), jnp.float32)],
        compiler_params=pltpu.CompilerParams(
            dimension_semantics=("arbitrary",),
            vmem_limit_bytes=vmem_limit),
    )(x_flat, wih_all, whh_all, b_all)


def init_encoder_params(key, input_size, embedding_size, hidden_size, nr_layers):
    """Raw PyTorch-layout parameters (gate order [i, f, g, o])."""
    params = {}
    k_emb, key = jax.random.split(key)
    params["embedding"] = jax.random.normal(
        k_emb, (input_size, embedding_size), jnp.float32)

    params["lstm"] = []
    bound = 1.0 / np.sqrt(hidden_size)
    for layer in range(nr_layers):
        in_dim = embedding_size if layer == 0 else hidden_size
        k1, k2, k3, k4, key = jax.random.split(key, 5)
        w_ih = jax.random.uniform(k1, (4 * hidden_size, in_dim),
                                  jnp.float32, -bound, bound)
        w_hh = jax.random.uniform(k2, (4 * hidden_size, hidden_size),
                                  jnp.float32, -bound, bound)
        b_ih = jax.random.uniform(k3, (4 * hidden_size,), jnp.float32, -bound, bound)
        b_hh = jax.random.uniform(k4, (4 * hidden_size,), jnp.float32, -bound, bound)
        params["lstm"].append((w_ih, w_hh, b_ih, b_hh))
    return params


def prepare_encoder_params(params, hidden_size):
    """One-time weight prep: transpose, pre-add biases, reorder gate columns
    [i,f,g,o] -> [i,f,o,g], pad each gate block to Hp=128k lanes, zero-pad rows to
    a common IN, stack over layers, and cast matmul operands to bf16."""
    H = hidden_size
    Hp = _ceil_to(H, _LANE)
    lstm = params["lstm"]
    E = params["embedding"].shape[1]
    Ep = _ceil_to(E, _LANE)
    IN = max(Ep, Hp)

    def gate_pad(mat, rows_out):
        rows_in = mat.shape[0]
        blocks = [mat[:, 0:H], mat[:, H:2 * H],
                  mat[:, 3 * H:4 * H], mat[:, 2 * H:3 * H]]        # i, f, o, g
        blocks = [jnp.pad(b, ((0, rows_out - rows_in), (0, Hp - H))) for b in blocks]
        return jnp.concatenate(blocks, axis=-1)                    # (rows_out, 4*Hp)

    wihs, whhs, bs = [], [], []
    for (w_ih, w_hh, b_ih, b_hh) in lstm:
        wihs.append(gate_pad(jnp.transpose(w_ih), IN))             # (IN, 4Hp)
        whhs.append(gate_pad(jnp.transpose(w_hh), Hp))             # (Hp, 4Hp)
        bs.append(gate_pad((b_ih + b_hh)[None, :], 1))             # (1, 4Hp)

    return {
        "embedding": params["embedding"],
        "wih": jnp.stack(wihs).astype(jnp.bfloat16),               # (L, IN, 4Hp)
        "whh": jnp.stack(whhs).astype(jnp.bfloat16),               # (L, Hp, 4Hp)
        "b": jnp.stack(bs).astype(jnp.float32),                    # (L, 1, 4Hp)
    }


@functools.partial(jax.jit, static_argnames=("hidden_size", "use_attention"))
def encoder_forward(prepped, index_vector, *, hidden_size, use_attention=False):
    """index_vector: (T, B) int32.  Returns (hidden, cell), or
    (results, (hidden, cell)) when use_attention=True — like the PyTorch module."""
    # TODO(synk): embedding gather left in XLA (jnp.take); fusing it into the kernel
    #             (scalar-prefetched indices + DMA gather) would save one HBM round
    #             trip of the embedded activations.
    # Dropout is identity at inference.
    x = jnp.take(prepped["embedding"], index_vector, axis=0).astype(jnp.float32)
    T, B, E = x.shape
    H = hidden_size
    Hp = prepped["whh"].shape[1]
    Ep = _ceil_to(E, _LANE)
    Bp = _ceil_to(max(B, _SUBLANE), _SUBLANE)

    # Pad batch to full sublanes and E to full lanes; cast matmul operand to bf16.
    x_pad = jnp.pad(x, ((0, 0), (0, Bp - B), (0, Ep - E)))
    x_flat = x_pad.reshape(T * Bp, Ep).astype(jnp.bfloat16)

    outs = _encoder_lstm_pallas(x_flat, prepped["wih"], prepped["whh"], prepped["b"],
                                T=T, Bp=Bp, return_sequence=use_attention)

    hidden = outs[0][:, :B, :H]
    cell = outs[1][:, :B, :H]
    if use_attention:
        results = outs[2].reshape(T, Bp, Hp)[:, :B, :H]
        return results, (hidden, cell)
    return hidden, cell


def _lstm_reference(params, index_vector):
    """Pure-JAX f32 reference (PyTorch gate order / math) for correctness checking."""
    x_seq = jnp.take(params["embedding"], index_vector, axis=0).astype(jnp.float32)
    hiddens, cells = [], []
    for (w_ih, w_hh, b_ih, b_hh) in params["lstm"]:
        H = w_hh.shape[1]
        B = x_seq.shape[1]
        h = jnp.zeros((B, H), jnp.float32)
        c = jnp.zeros((B, H), jnp.float32)
        ys = []
        for t in range(x_seq.shape[0]):
            g = x_seq[t] @ w_ih.T + h @ w_hh.T + b_ih + b_hh
            i = jax.nn.sigmoid(g[:, 0 * H:1 * H])
            f = jax.nn.sigmoid(g[:, 1 * H:2 * H])
            gg = jnp.tanh(g[:, 2 * H:3 * H])
            o = jax.nn.sigmoid(g[:, 3 * H:4 * H])
            c = f * c + i * gg
            h = o * jnp.tanh(c)
            ys.append(h)
        x_seq = jnp.stack(ys, axis=0)
        hiddens.append(h)
        cells.append(c)
    return jnp.stack(hiddens, 0), jnp.stack(cells, 0), x_seq


if __name__ == "__main__":
    # Small, module-consistent shapes.
    input_size = 50        # vocab
    embedding_size = 32
    hidden_size = 32
    nr_layers = 2
    dropout = 0.1          # identity at inference
    seq_len = 8
    batch = 2

    key = jax.random.PRNGKey(0)
    k_params, k_idx = jax.random.split(key)
    params = init_encoder_params(k_params, input_size, embedding_size,
                                 hidden_size, nr_layers)
    prepped = prepare_encoder_params(params, hidden_size)
    index_vector = jax.random.randint(k_idx, (seq_len, batch), 0, input_size,
                                      dtype=jnp.int32)

    # Default path: (hidden, cell) only (no sequence writeback).
    hidden, cell = encoder_forward(prepped, index_vector, hidden_size=hidden_size)
    jax.block_until_ready((hidden, cell))

    h_ref, c_ref, y_seq_ref = _lstm_reference(params, index_vector)
    # bf16 matmul operands -> loosened tolerances vs the f32 reference.
    np.testing.assert_allclose(np.asarray(hidden), np.asarray(h_ref),
                               rtol=2e-2, atol=2e-2)
    np.testing.assert_allclose(np.asarray(cell), np.asarray(c_ref),
                               rtol=2e-2, atol=2e-2)

    # use_attention=True path (also returns the top-layer sequence).
    results, (hidden_a, cell_a) = encoder_forward(
        prepped, index_vector, hidden_size=hidden_size, use_attention=True)
    jax.block_until_ready((results, hidden_a, cell_a))
    np.testing.assert_allclose(np.asarray(results), np.asarray(y_seq_ref),
                               rtol=2e-2, atol=2e-2)
    np.testing.assert_allclose(np.asarray(hidden_a), np.asarray(h_ref),
                               rtol=2e-2, atol=2e-2)
    np.testing.assert_allclose(np.asarray(cell_a), np.asarray(c_ref),
                               rtol=2e-2, atol=2e-2)

    assert hidden.shape == (nr_layers, batch, hidden_size)
    assert cell.shape == (nr_layers, batch, hidden_size)
    assert results.shape == (seq_len, batch, hidden_size)
    print("KERNEL_OK")
</pallas_src>

<mosaic_0001>
module attributes {stable_mosaic.version = 11 : i64} {
  func.func @kernel(%arg0: i32, %arg1: memref<64x128xbf16, #tpu.memory_space<vmem>>, %arg2: memref<1x128x512xbf16, #tpu.memory_space<vmem>>, %arg3: memref<1x128x512xbf16, #tpu.memory_space<vmem>>, %arg4: memref<1x1x512xf32, #tpu.memory_space<vmem>>, %arg5: memref<1x8x128xf32, #tpu.memory_space<vmem>>, %arg6: memref<1x8x128xf32, #tpu.memory_space<vmem>>, %arg7: memref<64x128xf32, #tpu.memory_space<vmem>>, %arg8: memref<64x512xf32, #tpu.memory_space<vmem>>) attributes {dimension_semantics = [#tpu.dimension_semantics<arbitrary>], iteration_bounds = array<i64: 2>, scalar_prefetch = 0 : i64, scratch_operands = 2 : i64, tpu.core_type = #tpu.core_type<tc>, window_params = [{pipeline_mode = #tpu.pipeline_mode<synchronous>, transform_indices = @transform_0, window_bounds = array<i64: 64, 128>}, {transform_indices = @transform_1, window_bounds = array<i64: 1, 128, 512>}, {transform_indices = @transform_2, window_bounds = array<i64: 1, 128, 512>}, {transform_indices = @transform_3, window_bounds = array<i64: 1, 1, 512>}, {transform_indices = @transform_4, window_bounds = array<i64: 1, 8, 128>}, {transform_indices = @transform_5, window_bounds = array<i64: 1, 8, 128>}]} {
    %c0_i32 = arith.constant 0 : i32
    %0 = arith.cmpi eq, %arg0, %c0_i32 : i32
    %1 = arith.extui %0 : i1 to i32
    %c0_i32_0 = arith.constant 0 : i32
    %2 = arith.cmpi ne, %1, %c0_i32_0 : i32
    scf.if %2 {
      %c0_74 = arith.constant 0 : index
      %c0_75 = arith.constant 0 : index
      %230 = vector.load %arg1[%c0_74, %c0_75] : memref<64x128xbf16, #tpu.memory_space<vmem>>, vector<64x128xbf16>
      %c0_76 = arith.constant 0 : index
      %c0_77 = arith.constant 0 : index
      %c0_78 = arith.constant 0 : index
      %231 = vector.load %arg2[%c0_76, %c0_77, %c0_78] : memref<1x128x512xbf16, #tpu.memory_space<vmem>>, vector<1x128x512xbf16>
      %232 = vector.shape_cast %231 : vector<1x128x512xbf16> to vector<128x512xbf16>
      %cst_79 = arith.constant dense<0.000000e+00> : vector<64x512xf32>
      %233 = tpu.matmul %230, %232, %cst_79 {dimension_numbers = #tpu.dot_dimension_numbers<[1], [0], [0], [1], [0, 0, 1, 1], [], []>} : vector<64x128xbf16>, vector<128x512xbf16>, vector<64x512xf32> -> vector<64x512xf32>
      %c0_80 = arith.constant 0 : index
      %c0_81 = arith.constant 0 : index
      %c0_82 = arith.constant 0 : index
      %234 = vector.load %arg4[%c0_80, %c0_81, %c0_82] : memref<1x1x512xf32, #tpu.memory_space<vmem>>, vector<1x1x512xf32>
      %235 = vector.shape_cast %234 : vector<1x1x512xf32> to vector<1x512xf32>
      %236 = vector.broadcast %235 : vector<1x512xf32> to vector<64x512xf32>
      %237 = arith.addf %233, %236 : vector<64x512xf32>
      %c0_83 = arith.constant 0 : index
      %c0_84 = arith.constant 0 : index
      %238 = vector.load %arg8[%c0_83, %c0_84] : memref<64x512xf32, #tpu.memory_space<vmem>>, vector<64x512xf32>
      tpu.vector_store %arg8[%c0_83, %c0_84], %237 {strides = array<i32>} : memref<64x512xf32, #tpu.memory_space<vmem>>, vector<64x512xf32>,
    } else {
    }
    %c0_i32_1 = arith.constant 0 : i32
    %3 = arith.cmpi sgt, %arg0, %c0_i32_1 : i32
    %4 = arith.extui %3 : i1 to i32
    %c0_i32_2 = arith.constant 0 : i32
    %5 = arith.cmpi ne, %4, %c0_i32_2 : i32
    scf.if %5 {
      %c0_74 = arith.constant 0 : index
      %c0_75 = arith.constant 0 : index
      %230 = vector.load %arg7[%c0_74, %c0_75] : memref<64x128xf32, #tpu.memory_space<vmem>>, vector<64x128xf32>
      %231 = arith.truncf %230 : vector<64x128xf32> to vector<64x128xbf16>
      %c0_76 = arith.constant 0 : index
      %c0_77 = arith.constant 0 : index
      %c0_78 = arith.constant 0 : index
      %232 = vector.load %arg2[%c0_76, %c0_77, %c0_78] : memref<1x128x512xbf16, #tpu.memory_space<vmem>>, vector<1x128x512xbf16>
      %233 = vector.shape_cast %232 : vector<1x128x512xbf16> to vector<128x512xbf16>
      %cst_79 = arith.constant dense<0.000000e+00> : vector<64x512xf32>
      %234 = tpu.matmul %231, %233, %cst_79 {dimension_numbers = #tpu.dot_dimension_numbers<[1], [0], [0], [1], [0, 0, 1, 1], [], []>} : vector<64x128xbf16>, vector<128x512xbf16>, vector<64x512xf32> -> vector<64x512xf32>
      %c0_80 = arith.constant 0 : index
      %c0_81 = arith.constant 0 : index
      %c0_82 = arith.constant 0 : index
      %235 = vector.load %arg4[%c0_80, %c0_81, %c0_82] : memref<1x1x512xf32, #tpu.memory_space<vmem>>, vector<1x1x512xf32>
      %236 = vector.shape_cast %235 : vector<1x1x512xf32> to vector<1x512xf32>
      %237 = vector.broadcast %236 : vector<1x512xf32> to vector<64x512xf32>
      %238 = arith.addf %234, %237 : vector<64x512xf32>
      %c0_83 = arith.constant 0 : index
      %c0_84 = arith.constant 0 : index
      %239 = vector.load %arg8[%c0_83, %c0_84] : memref<64x512xf32, #tpu.memory_space<vmem>>, vector<64x512xf32>
      tpu.vector_store %arg8[%c0_83, %c0_84], %238 {strides = array<i32>} : memref<64x512xf32, #tpu.memory_space<vmem>>, vector<64x512xf32>,
    } else {
    }
    %cst = arith.constant 0.000000e+00 : f32
    %6 = vector.broadcast %cst : f32 to vector<8x128xf32>
    %cst_3 = arith.constant 0.000000e+00 : f32
    %7 = vector.broadcast %cst_3 : f32 to vector<8x128xf32>
    %c0_i32_4 = arith.constant 0 : i32
    %c8_i32 = arith.constant 8 : i32
    %8 = arith.muli %c0_i32_4, %c8_i32 : i32
    %9 = tpu.assume_multiple %8, 8 : i32
    %10 = arith.index_cast %9 : i32 to index
    %c0 = arith.constant 0 : index
    %11 = vector.load %arg8[%10, %c0] : memref<64x512xf32, #tpu.memory_space<vmem>>, vector<8x512xf32>
    %12 = arith.truncf %6 : vector<8x128xf32> to vector<8x128xbf16>
    %c0_5 = arith.constant 0 : index
    %c0_6 = arith.constant 0 : index
    %c0_7 = arith.constant 0 : index
    %13 = vector.load %arg3[%c0_5, %c0_6, %c0_7] : memref<1x128x512xbf16, #tpu.memory_space<vmem>>, vector<1x128x512xbf16>
    %14 = vector.shape_cast %13 : vector<1x128x512xbf16> to vector<128x512xbf16>
    %cst_8 = arith.constant dense<0.000000e+00> : vector<8x512xf32>
    %15 = tpu.matmul %12, %14, %cst_8 {dimension_numbers = #tpu.dot_dimension_numbers<[1], [0], [0], [1], [0, 0, 1, 1], [], []>} : vector<8x128xbf16>, vector<128x512xbf16>, vector<8x512xf32> -> vector<8x512xf32>
    %16 = arith.addf %11, %15 : vector<8x512xf32>
    %17 = vector.extract_strided_slice %16 {offsets = [0, 0], sizes = [8, 384], strides = [1, 1]} : vector<8x512xf32> to vector<8x384xf32>
    %18 = arith.negf %17 : vector<8x384xf32>
    %19 = math.exp %18 : vector<8x384xf32>
    %cst_9 = arith.constant 1.000000e+00 : f32
    %20 = vector.broadcast %cst_9 : f32 to vector<8x384xf32>
    %21 = arith.addf %20, %19 : vector<8x384xf32>
    %22 = arith.divf %20, %21 : vector<8x384xf32>
    %23 = vector.extract_strided_slice %16 {offsets = [0, 384], sizes = [8, 128], strides = [1, 1]} : vector<8x512xf32> to vector<8x128xf32>
    %24 = math.tanh %23 : vector<8x128xf32>
    %25 = vector.extract_strided_slice %22 {offsets = [0, 128], sizes = [8, 128], strides = [1, 1]} : vector<8x384xf32> to vector<8x128xf32>
    %26 = arith.mulf %25, %7 : vector<8x128xf32>
    %27 = vector.extract_strided_slice %22 {offsets = [0, 0], sizes = [8, 128], strides = [1, 1]} : vector<8x384xf32> to vector<8x128xf32>
    %28 = arith.mulf %27, %24 : vector<8x128xf32>
    %29 = arith.addf %26, %28 : vector<8x128xf32>
    %30 = vector.extract_strided_slice %22 {offsets = [0, 256], sizes = [8, 128], strides = [1, 1]} : vector<8x384xf32> to vector<8x128xf32>
    %31 = math.tanh %29 : vector<8x128xf32>
    %32 = arith.mulf %30, %31 : vector<8x128xf32>
    %33 = arith.index_cast %9 : i32 to index
    %c0_10 = arith.constant 0 : index
    %34 = vector.load %arg7[%33, %c0_10] : memref<64x128xf32, #tpu.memory_space<vmem>>, vector<8x128xf32>
    tpu.vector_store %arg7[%33, %c0_10], %32 {strides = array<i32>} : memref<64x128xf32, #tpu.memory_space<vmem>>, vector<8x128xf32>,
    %c1_i32 = arith.constant 1 : i32
    %c8_i32_11 = arith.constant 8 : i32
    %35 = arith.muli %c1_i32, %c8_i32_11 : i32
    %36 = tpu.assume_multiple %35, 8 : i32
    %37 = arith.index_cast %36 : i32 to index
    %c0_12 = arith.constant 0 : index
    %38 = vector.load %arg8[%37, %c0_12] : memref<64x512xf32, #tpu.memory_space<vmem>>, vector<8x512xf32>
    %39 = arith.truncf %32 : vector<8x128xf32> to vector<8x128xbf16>
    %c0_13 = arith.constant 0 : index
    %c0_14 = arith.constant 0 : index
    %c0_15 = arith.constant 0 : index
    %40 = vector.load %arg3[%c0_13, %c0_14, %c0_15] : memref<1x128x512xbf16, #tpu.memory_space<vmem>>, vector<1x128x512xbf16>
    %41 = vector.shape_cast %40 : vector<1x128x512xbf16> to vector<128x512xbf16>
    %cst_16 = arith.constant dense<0.000000e+00> : vector<8x512xf32>
    %42 = tpu.matmul %39, %41, %cst_16 {dimension_numbers = #tpu.dot_dimension_numbers<[1], [0], [0], [1], [0, 0, 1, 1], [], []>} : vector<8x128xbf16>, vector<128x512xbf16>, vector<8x512xf32> -> vector<8x512xf32>
    %43 = arith.addf %38, %42 : vector<8x512xf32>
    %44 = vector.extract_strided_slice %43 {offsets = [0, 0], sizes = [8, 384], strides = [1, 1]} : vector<8x512xf32> to vector<8x384xf32>
    %45 = arith.negf %44 : vector<8x384xf32>
    %46 = math.exp %45 : vector<8x384xf32>
    %cst_17 = arith.constant 1.000000e+00 : f32
    %47 = vector.broadcast %cst_17 : f32 to vector<8x384xf32>
    %48 = arith.addf %47, %46 : vector<8x384xf32>
    %49 = arith.divf %47, %48 : vector<8x384xf32>
    %50 = vector.extract_strided_slice %43 {offsets = [0, 384], sizes = [8, 128], strides = [1, 1]} : vector<8x512xf32> to vector<8x128xf32>
    %51 = math.tanh %50 : vector<8x128xf32>
    %52 = vector.extract_strided_slice %49 {offsets = [0, 128], sizes = [8, 128], strides = [1, 1]} : vector<8x384xf32> to vector<8x128xf32>
    %53 = arith.mulf %52, %29 : vector<8x128xf32>
    %54 = vector.extract_strided_slice %49 {offsets = [0, 0], sizes = [8, 128], strides = [1, 1]} : vector<8x384xf32> to vector<8x128xf32>
    %55 = arith.mulf %54, %51 : vector<8x128xf32>
    %56 = arith.addf %53, %55 : vector<8x128xf32>
    %57 = vector.extract_strided_slice %49 {offsets = [0, 256], sizes = [8, 128], strides = [1, 1]} : vector<8x384xf32> to vector<8x128xf32>
    %58 = math.tanh %56 : vector<8x128xf32>
    %59 = arith.mulf %57, %58 : vector<8x128xf32>
    %60 = arith.index_cast %36 : i32 to index
    %c0_18 = arith.constant 0 : index
    %61 = vector.load %arg7[%60, %c0_18] : memref<64x128xf32, #tpu.memory_space<vmem>>, vector<8x128xf32>
    tpu.vector_store %arg7[%60, %c0_18], %59 {strides = array<i32>} : memref<64x128xf32, #tpu.memory_space<vmem>>, vector<8x128xf32>,
    %c2_i32 = arith.constant 2 : i32
    %c8_i32_19 = arith.constant 8 : i32
    %62 = arith.muli %c2_i32, %c8_i32_19 : i32
    %63 = tpu.assume_multiple %62, 8 : i32
    %64 = arith.index_cast %63 : i32 to index
    %c0_20 = arith.constant 0 : index
    %65 = vector.load %arg8[%64, %c0_20] : memref<64x512xf32, #tpu.memory_space<vmem>>, vector<8x512xf32>
    %66 = arith.truncf %59 : vector<8x128xf32> to vector<8x128xbf16>
    %c0_21 = arith.constant 0 : index
    %c0_22 = arith.constant 0 : index
    %c0_23 = arith.constant 0 : index
    %67 = vector.load %arg3[%c0_21, %c0_22, %c0_23] : memref<1x128x512xbf16, #tpu.memory_space<vmem>>, vector<1x128x512xbf16>
    %68 = vector.shape_cast %67 : vector<1x128x512xbf16> to vector<128x512xbf16>
    %cst_24 = arith.constant dense<0.000000e+00> : vector<8x512xf32>
    %69 = tpu.matmul %66, %68, %cst_24 {dimension_numbers = #tpu.dot_dimension_numbers<[1], [0], [0], [1], [0, 0, 1, 1], [], []>} : vector<8x128xbf16>, vector<128x512xbf16>, vector<8x512xf32> -> vector<8x512xf32>
    %70 = arith.addf %65, %69 : vector<8x512xf32>
    %71 = vector.extract_strided_slice %70 {offsets = [0, 0], sizes = [8, 384], strides = [1, 1]} : vector<8x512xf32> to vector<8x384xf32>
    %72 = arith.negf %71 : vector<8x384xf32>
    %73 = math.exp %72 : vector<8x384xf32>
    %cst_25 = arith.constant 1.000000e+00 : f32
    %74 = vector.broadcast %cst_25 : f32 to vector<8x384xf32>
    %75 = arith.addf %74, %73 : vector<8x384xf32>
    %76 = arith.divf %74, %75 : vector<8x384xf32>
    %77 = vector.extract_strided_slice %70 {offsets = [0, 384], sizes = [8, 128], strides = [1, 1]} : vector<8x512xf32> to vector<8x128xf32>
    %78 = math.tanh %77 : vector<8x128xf32>
    %79 = vector.extract_strided_slice %76 {offsets = [0, 128], sizes = [8, 128], strides = [1, 1]} : vector<8x384xf32> to vector<8x128xf32>
    %80 = arith.mulf %79, %56 : vector<8x128xf32>
    %81 = vector.extract_strided_slice %76 {offsets = [0, 0], sizes = [8, 128], strides = [1, 1]} : vector<8x384xf32> to vector<8x128xf32>
    %82 = arith.mulf %81, %78 : vector<8x128xf32>
    %83 = arith.addf %80, %82 : vector<8x128xf32>
    %84 = vector.extract_strided_slice %76 {offsets = [0, 256], sizes = [8, 128], strides = [1, 1]} : vector<8x384xf32> to vector<8x128xf32>
    %85 = math.tanh %83 : vector<8x128xf32>
    %86 = arith.mulf %84, %85 : vector<8x128xf32>
    %87 = arith.index_cast %63 : i32 to index
    %c0_26 = arith.constant 0 : index
    %88 = vector.load %arg7[%87, %c0_26] : memref<64x128xf32, #tpu.memory_space<vmem>>, vector<8x128xf32>
    tpu.vector_store %arg7[%87, %c0_26], %86 {strides = array<i32>} : memref<64x128xf32, #tpu.memory_space<vmem>>, vector<8x128xf32>,
    %c3_i32 = arith.constant 3 : i32
    %c8_i32_27 = arith.constant 8 : i32
    %89 = arith.muli %c3_i32, %c8_i32_27 : i32
    %90 = tpu.assume_multiple %89, 8 : i32
    %91 = arith.index_cast %90 : i32 to index
    %c0_28 = arith.constant 0 : index
    %92 = vector.load %arg8[%91, %c0_28] : memref<64x512xf32, #tpu.memory_space<vmem>>, vector<8x512xf32>
    %93 = arith.truncf %86 : vector<8x128xf32> to vector<8x128xbf16>
    %c0_29 = arith.constant 0 : index
    %c0_30 = arith.constant 0 : index
    %c0_31 = arith.constant 0 : index
    %94 = vector.load %arg3[%c0_29, %c0_30, %c0_31] : memref<1x128x512xbf16, #tpu.memory_space<vmem>>, vector<1x128x512xbf16>
    %95 = vector.shape_cast %94 : vector<1x128x512xbf16> to vector<128x512xbf16>
    %cst_32 = arith.constant dense<0.000000e+00> : vector<8x512xf32>
    %96 = tpu.matmul %93, %95, %cst_32 {dimension_numbers = #tpu.dot_dimension_numbers<[1], [0], [0], [1], [0, 0, 1, 1], [], []>} : vector<8x128xbf16>, vector<128x512xbf16>, vector<8x512xf32> -> vector<8x512xf32>
    %97 = arith.addf %92, %96 : vector<8x512xf32>
    %98 = vector.extract_strided_slice %97 {offsets = [0, 0], sizes = [8, 384], strides = [1, 1]} : vector<8x512xf32> to vector<8x384xf32>
    %99 = arith.negf %98 : vector<8x384xf32>
    %100 = math.exp %99 : vector<8x384xf32>
    %cst_33 = arith.constant 1.000000e+00 : f32
    %101 = vector.broadcast %cst_33 : f32 to vector<8x384xf32>
    %102 = arith.addf %101, %100 : vector<8x384xf32>
    %103 = arith.divf %101, %102 : vector<8x384xf32>
    %104 = vector.extract_strided_slice %97 {offsets = [0, 384], sizes = [8, 128], strides = [1, 1]} : vector<8x512xf32> to vector<8x128xf32>
    %105 = math.tanh %104 : vector<8x128xf32>
    %106 = vector.extract_strided_slice %103 {offsets = [0, 128], sizes = [8, 128], strides = [1, 1]} : vector<8x384xf32> to vector<8x128xf32>
    %107 = arith.mulf %106, %83 : vector<8x128xf32>
    %108 = vector.extract_strided_slice %103 {offsets = [0, 0], sizes = [8, 128], strides = [1, 1]} : vector<8x384xf32> to vector<8x128xf32>
    %109 = arith.mulf %108, %105 : vector<8x128xf32>
    %110 = arith.addf %107, %109 : vector<8x128xf32>
    %111 = vector.extract_strided_slice %103 {offsets = [0, 256], sizes = [8, 128], strides = [1, 1]} : vector<8x384xf32> to vector<8x128xf32>
    %112 = math.tanh %110 : vector<8x128xf32>
    %113 = arith.mulf %111, %112 : vector<8x128xf32>
    %114 = arith.index_cast %90 : i32 to index
    %c0_34 = arith.constant 0 : index
    %115 = vector.load %arg7[%114, %c0_34] : memref<64x128xf32, #tpu.memory_space<vmem>>, vector<8x128xf32>
    tpu.vector_store %arg7[%114, %c0_34], %113 {strides = array<i32>} : memref<64x128xf32, #tpu.memory_space<vmem>>, vector<8x128xf32>,
    %c4_i32 = arith.constant 4 : i32
    %c8_i32_35 = arith.constant 8 : i32
    %116 = arith.muli %c4_i32, %c8_i32_35 : i32
    %117 = tpu.assume_multiple %116, 8 : i32
    %118 = arith.index_cast %117 : i32 to index
    %c0_36 = arith.constant 0 : index
    %119 = vector.load %arg8[%118, %c0_36] : memref<64x512xf32, #tpu.memory_space<vmem>>, vector<8x512xf32>
    %120 = arith.truncf %113 : vector<8x128xf32> to vector<8x128xbf16>
    %c0_37 = arith.constant 0 : index
    %c0_38 = arith.constant 0 : index
    %c0_39 = arith.constant 0 : index
    %121 = vector.load %arg3[%c0_37, %c0_38, %c0_39] : memref<1x128x512xbf16, #tpu.memory_space<vmem>>, vector<1x128x512xbf16>
    %122 = vector.shape_cast %121 : vector<1x128x512xbf16> to vector<128x512xbf16>
    %cst_40 = arith.constant dense<0.000000e+00> : vector<8x512xf32>
    %123 = tpu.matmul %120, %122, %cst_40 {dimension_numbers = #tpu.dot_dimension_numbers<[1], [0], [0], [1], [0, 0, 1, 1], [], []>} : vector<8x128xbf16>, vector<128x512xbf16>, vector<8x512xf32> -> vector<8x512xf32>
    %124 = arith.addf %119, %123 : vector<8x512xf32>
    %125 = vector.extract_strided_slice %124 {offsets = [0, 0], sizes = [8, 384], strides = [1, 1]} : vector<8x512xf32> to vector<8x384xf32>
    %126 = arith.negf %125 : vector<8x384xf32>
    %127 = math.exp %126 : vector<8x384xf32>
    %cst_41 = arith.constant 1.000000e+00 : f32
    %128 = vector.broadcast %cst_41 : f32 to vector<8x384xf32>
    %129 = arith.addf %128, %127 : vector<8x384xf32>
    %130 = arith.divf %128, %129 : vector<8x384xf32>
    %131 = vector.extract_strided_slice %124 {offsets = [0, 384], sizes = [8, 128], strides = [1, 1]} : vector<8x512xf32> to vector<8x128xf32>
    %132 = math.tanh %131 : vector<8x128xf32>
    %133 = vector.extract_strided_slice %130 {offsets = [0, 128], sizes = [8, 128], strides = [1, 1]} : vector<8x384xf32> to vector<8x128xf32>
    %134 = arith.mulf %133, %110 : vector<8x128xf32>
    %135 = vector.extract_strided_slice %130 {offsets = [0, 0], sizes = [8, 128], strides = [1, 1]} : vector<8x384xf32> to vector<8x128xf32>
    %136 = arith.mulf %135, %132 : vector<8x128xf32>
    %137 = arith.addf %134, %136 : vector<8x128xf32>
    %138 = vector.extract_strided_slice %130 {offsets = [0, 256], sizes = [8, 128], strides = [1, 1]} : vector<8x384xf32> to vector<8x128xf32>
    %139 = math.tanh %137 : vector<8x128xf32>
    %140 = arith.mulf %138, %139 : vector<8x128xf32>
    %141 = arith.index_cast %117 : i32 to index
    %c0_42 = arith.constant 0 : index
    %142 = vector.load %arg7[%141, %c0_42] : memref<64x128xf32, #tpu.memory_space<vmem>>, vector<8x128xf32>
    tpu.vector_store %arg7[%141, %c0_42], %140 {strides = array<i32>} : memref<64x128xf32, #tpu.memory_space<vmem>>, vector<8x128xf32>,
    %c5_i32 = arith.constant 5 : i32
    %c8_i32_43 = arith.constant 8 : i32
    %143 = arith.muli %c5_i32, %c8_i32_43 : i32
    %144 = tpu.assume_multiple %143, 8 : i32
    %145 = arith.index_cast %144 : i32 to index
    %c0_44 = arith.constant 0 : index
    %146 = vector.load %arg8[%145, %c0_44] : memref<64x512xf32, #tpu.memory_space<vmem>>, vector<8x512xf32>
    %147 = arith.truncf %140 : vector<8x128xf32> to vector<8x128xbf16>
    %c0_45 = arith.constant 0 : index
    %c0_46 = arith.constant 0 : index
    %c0_47 = arith.constant 0 : index
    %148 = vector.load %arg3[%c0_45, %c0_46, %c0_47] : memref<1x128x512xbf16, #tpu.memory_space<vmem>>, vector<1x128x512xbf16>
    %149 = vector.shape_cast %148 : vector<1x128x512xbf16> to vector<128x512xbf16>
    %cst_48 = arith.constant dense<0.000000e+00> : vector<8x512xf32>
    %150 = tpu.matmul %147, %149, %cst_48 {dimension_numbers = #tpu.dot_dimension_numbers<[1], [0], [0], [1], [0, 0, 1, 1], [], []>} : vector<8x128xbf16>, vector<128x512xbf16>, vector<8x512xf32> -> vector<8x512xf32>
    %151 = arith.addf %146, %150 : vector<8x512xf32>
    %152 = vector.extract_strided_slice %151 {offsets = [0, 0], sizes = [8, 384], strides = [1, 1]} : vector<8x512xf32> to vector<8x384xf32>
    %153 = arith.negf %152 : vector<8x384xf32>
    %154 = math.exp %153 : vector<8x384xf32>
    %cst_49 = arith.constant 1.000000e+00 : f32
    %155 = vector.broadcast %cst_49 : f32 to vector<8x384xf32>
    %156 = arith.addf %155, %154 : vector<8x384xf32>
    %157 = arith.divf %155, %156 : vector<8x384xf32>
    %158 = vector.extract_strided_slice %151 {offsets = [0, 384], sizes = [8, 128], strides = [1, 1]} : vector<8x512xf32> to vector<8x128xf32>
    %159 = math.tanh %158 : vector<8x128xf32>
    %160 = vector.extract_strided_slice %157 {offsets = [0, 128], sizes = [8, 128], strides = [1, 1]} : vector<8x384xf32> to vector<8x128xf32>
    %161 = arith.mulf %160, %137 : vector<8x128xf32>
    %162 = vector.extract_strided_slice %157 {offsets = [0, 0], sizes = [8, 128], strides = [1, 1]} : vector<8x384xf32> to vector<8x128xf32>
    %163 = arith.mulf %162, %159 : vector<8x128xf32>
    %164 = arith.addf %161, %163 : vector<8x128xf32>
    %165 = vector.extract_strided_slice %157 {offsets = [0, 256], sizes = [8, 128], strides = [1, 1]} : vector<8x384xf32> to vector<8x128xf32>
    %166 = math.tanh %164 : vector<8x128xf32>
    %167 = arith.mulf %165, %166 : vector<8x128xf32>
    %168 = arith.index_cast %144 : i32 to index
    %c0_50 = arith.constant 0 : index
    %169 = vector.load %arg7[%168, %c0_50] : memref<64x128xf32, #tpu.memory_space<vmem>>, vector<8x128xf32>
    tpu.vector_store %arg7[%168, %c0_50], %167 {strides = array<i32>} : memref<64x128xf32, #tpu.memory_space<vmem>>, vector<8x128xf32>,
    %c6_i32 = arith.constant 6 : i32
    %c8_i32_51 = arith.constant 8 : i32
    %170 = arith.muli %c6_i32, %c8_i32_51 : i32
    %171 = tpu.assume_multiple %170, 8 : i32
    %172 = arith.index_cast %171 : i32 to index
    %c0_52 = arith.constant 0 : index
    %173 = vector.load %arg8[%172, %c0_52] : memref<64x512xf32, #tpu.memory_space<vmem>>, vector<8x512xf32>
    %174 = arith.truncf %167 : vector<8x128xf32> to vector<8x128xbf16>
    %c0_53 = arith.constant 0 : index
    %c0_54 = arith.constant 0 : index
    %c0_55 = arith.constant 0 : index
    %175 = vector.load %arg3[%c0_53, %c0_54, %c0_55] : memref<1x128x512xbf16, #tpu.memory_space<vmem>>, vector<1x128x512xbf16>
    %176 = vector.shape_cast %175 : vector<1x128x512xbf16> to vector<128x512xbf16>
    %cst_56 = arith.constant dense<0.000000e+00> : vector<8x512xf32>
    %177 = tpu.matmul %174, %176, %cst_56 {dimension_numbers = #tpu.dot_dimension_numbers<[1], [0], [0], [1], [0, 0, 1, 1], [], []>} : vector<8x128xbf16>, vector<128x512xbf16>, vector<8x512xf32> -> vector<8x512xf32>
    %178 = arith.addf %173, %177 : vector<8x512xf32>
    %179 = vector.extract_strided_slice %178 {offsets = [0, 0], sizes = [8, 384], strides = [1, 1]} : vector<8x512xf32> to vector<8x384xf32>
    %180 = arith.negf %179 : vector<8x384xf32>
    %181 = math.exp %180 : vector<8x384xf32>
    %cst_57 = arith.constant 1.000000e+00 : f32
    %182 = vector.broadcast %cst_57 : f32 to vector<8x384xf32>
    %183 = arith.addf %182, %181 : vector<8x384xf32>
    %184 = arith.divf %182, %183 : vector<8x384xf32>
    %185 = vector.extract_strided_slice %178 {offsets = [0, 384], sizes = [8, 128], strides = [1, 1]} : vector<8x512xf32> to vector<8x128xf32>
    %186 = math.tanh %185 : vector<8x128xf32>
    %187 = vector.extract_strided_slice %184 {offsets = [0, 128], sizes = [8, 128], strides = [1, 1]} : vector<8x384xf32> to vector<8x128xf32>
    %188 = arith.mulf %187, %164 : vector<8x128xf32>
    %189 = vector.extract_strided_slice %184 {offsets = [0, 0], sizes = [8, 128], strides = [1, 1]} : vector<8x384xf32> to vector<8x128xf32>
    %190 = arith.mulf %189, %186 : vector<8x128xf32>
    %191 = arith.addf %188, %190 : vector<8x128xf32>
    %192 = vector.extract_strided_slice %184 {offsets = [0, 256], sizes = [8, 128], strides = [1, 1]} : vector<8x384xf32> to vector<8x128xf32>
    %193 = math.tanh %191 : vector<8x128xf32>
    %194 = arith.mulf %192, %193 : vector<8x128xf32>
    %195 = arith.index_cast %171 : i32 to index
    %c0_58 = arith.constant 0 : index
    %196 = vector.load %arg7[%195, %c0_58] : memref<64x128xf32, #tpu.memory_space<vmem>>, vector<8x128xf32>
    tpu.vector_store %arg7[%195, %c0_58], %194 {strides = array<i32>} : memref<64x128xf32, #tpu.memory_space<vmem>>, vector<8x128xf32>,
    %c7_i32 = arith.constant 7 : i32
    %c8_i32_59 = arith.constant 8 : i32
    %197 = arith.muli %c7_i32, %c8_i32_59 : i32
    %198 = tpu.assume_multiple %197, 8 : i32
    %199 = arith.index_cast %198 : i32 to index
    %c0_60 = arith.constant 0 : index
    %200 = vector.load %arg8[%199, %c0_60] : memref<64x512xf32, #tpu.memory_space<vmem>>, vector<8x512xf32>
    %201 = arith.truncf %194 : vector<8x128xf32> to vector<8x128xbf16>
    %c0_61 = arith.constant 0 : index
    %c0_62 = arith.constant 0 : index
    %c0_63 = arith.constant 0 : index
    %202 = vector.load %arg3[%c0_61, %c0_62, %c0_63] : memref<1x128x512xbf16, #tpu.memory_space<vmem>>, vector<1x128x512xbf16>
    %203 = vector.shape_cast %202 : vector<1x128x512xbf16> to vector<128x512xbf16>
    %cst_64 = arith.constant dense<0.000000e+00> : vector<8x512xf32>
    %204 = tpu.matmul %201, %203, %cst_64 {dimension_numbers = #tpu.dot_dimension_numbers<[1], [0], [0], [1], [0, 0, 1, 1], [], []>} : vector<8x128xbf16>, vector<128x512xbf16>, vector<8x512xf32> -> vector<8x512xf32>
    %205 = arith.addf %200, %204 : vector<8x512xf32>
    %206 = vector.extract_strided_slice %205 {offsets = [0, 0], sizes = [8, 384], strides = [1, 1]} : vector<8x512xf32> to vector<8x384xf32>
    %207 = arith.negf %206 : vector<8x384xf32>
    %208 = math.exp %207 : vector<8x384xf32>
    %cst_65 = arith.constant 1.000000e+00 : f32
    %209 = vector.broadcast %cst_65 : f32 to vector<8x384xf32>
    %210 = arith.addf %209, %208 : vector<8x384xf32>
    %211 = arith.divf %209, %210 : vector<8x384xf32>
    %212 = vector.extract_strided_slice %205 {offsets = [0, 384], sizes = [8, 128], strides = [1, 1]} : vector<8x512xf32> to vector<8x128xf32>
    %213 = math.tanh %212 : vector<8x128xf32>
    %214 = vector.extract_strided_slice %211 {offsets = [0, 128], sizes = [8, 128], strides = [1, 1]} : vector<8x384xf32> to vector<8x128xf32>
    %215 = arith.mulf %214, %191 : vector<8x128xf32>
    %216 = vector.extract_strided_slice %211 {offsets = [0, 0], sizes = [8, 128], strides = [1, 1]} : vector<8x384xf32> to vector<8x128xf32>
    %217 = arith.mulf %216, %213 : vector<8x128xf32>
    %218 = arith.addf %215, %217 : vector<8x128xf32>
    %219 = vector.extract_strided_slice %211 {offsets = [0, 256], sizes = [8, 128], strides = [1, 1]} : vector<8x384xf32> to vector<8x128xf32>
    %220 = math.tanh %218 : vector<8x128xf32>
    %221 = arith.mulf %219, %220 : vector<8x128xf32>
    %222 = arith.index_cast %198 : i32 to index
    %c0_66 = arith.constant 0 : index
    %223 = vector.load %arg7[%222, %c0_66] : memref<64x128xf32, #tpu.memory_space<vmem>>, vector<8x128xf32>
    tpu.vector_store %arg7[%222, %c0_66], %221 {strides = array<i32>} : memref<64x128xf32, #tpu.memory_space<vmem>>, vector<8x128xf32>,
    %c8_i32_67 = arith.constant 8 : i32
    %c0_68 = arith.constant 0 : index
    %c0_69 = arith.constant 0 : index
    %c0_70 = arith.constant 0 : index
    %224 = vector.load %arg5[%c0_68, %c0_69, %c0_70] : memref<1x8x128xf32, #tpu.memory_space<vmem>>, vector<1x8x128xf32>
    %225 = vector.shape_cast %224 : vector<1x8x128xf32> to vector<8x128xf32>
    %226 = vector.shape_cast %221 : vector<8x128xf32> to vector<1x8x128xf32>
    tpu.vector_store %arg5[%c0_68, %c0_69, %c0_70], %226 {strides = array<i32>} : memref<1x8x128xf32, #tpu.memory_space<vmem>>, vector<1x8x128xf32>,
    %c0_71 = arith.constant 0 : index
    %c0_72 = arith.constant 0 : index
    %c0_73 = arith.constant 0 : index
    %227 = vector.load %arg6[%c0_71, %c0_72, %c0_73] : memref<1x8x128xf32, #tpu.memory_space<vmem>>, vector<1x8x128xf32>
    %228 = vector.shape_cast %227 : vector<1x8x128xf32> to vector<8x128xf32>
    %229 = vector.shape_cast %218 : vector<8x128xf32> to vector<1x8x128xf32>
    tpu.vector_store %arg6[%c0_71, %c0_72, %c0_73], %229 {strides = array<i32>} : memref<1x8x128xf32, #tpu.memory_space<vmem>>, vector<1x8x128xf32>,
    return
  }
  func.func @transform_0(%arg0: i32) -> (i32, i32) {
    %c0_i32 = arith.constant 0 : i32
    %c0_i32_0 = arith.constant 0 : i32
    %c0_i32_1 = arith.constant 0 : i32
    return %c0_i32, %c0_i32_0 : i32, i32
  }
  func.func @transform_1(%arg0: i32) -> (i32, i32, i32) {
    %c0_i32 = arith.constant 0 : i32
    %c0_i32_0 = arith.constant 0 : i32
    %c0_i32_1 = arith.constant 0 : i32
    return %arg0, %c0_i32, %c0_i32_0 : i32, i32, i32
  }
  func.func @transform_2(%arg0: i32) -> (i32, i32, i32) {
    %c0_i32 = arith.constant 0 : i32
    %c0_i32_0 = arith.constant 0 : i32
    %c0_i32_1 = arith.constant 0 : i32
    return %arg0, %c0_i32, %c0_i32_0 : i32, i32, i32
  }
  func.func @transform_3(%arg0: i32) -> (i32, i32, i32) {
    %c0_i32 = arith.constant 0 : i32
    %c0_i32_0 = arith.constant 0 : i32
    %c0_i32_1 = arith.constant 0 : i32
    return %arg0, %c0_i32, %c0_i32_0 : i32, i32, i32
  }
  func.func @transform_4(%arg0: i32) -> (i32, i32, i32) {
    %c0_i32 = arith.constant 0 : i32
    %c0_i32_0 = arith.constant 0 : i32
    %c0_i32_1 = arith.constant 0 : i32
    return %arg0, %c0_i32, %c0_i32_0 : i32, i32, i32
  }
  func.func @transform_5(%arg0: i32) -> (i32, i32, i32) {
    %c0_i32 = arith.constant 0 : i32
    %c0_i32_0 = arith.constant 0 : i32
    %c0_i32_1 = arith.constant 0 : i32
    return %arg0, %c0_i32, %c0_i32_0 : i32, i32, i32
  }
}

</mosaic_0001>

<bundles_post_ra>
// kernel: encoder_forward.1
= control target key start
LH: loop header
LB: loop body
LE: loop exit
PB: predicated region body
PF: predicated region fallthrough
CT: control target
= control target key end

     0   :  { %11 = vsyncpa [#allocation5], 0  ;;  %s5513_s0 = inlined_call_operand.vmem [shape: bf16[64,128], index: 0, kind: input, shape index: {}]   ;;  %s5514_s1 = inlined_call_operand.hbm [shape: bf16[2,128,512], index: 1, kind: input, shape index: {}]   ;;  %s5515_s2 = inlined_call_operand.hbm [shape: bf16[2,128,512], index: 2, kind: input, shape index: {}]   ;;  %s5516_s3 = inlined_call_operand.vmem [shape: f32[2,1,512], index: 3, kind: input, shape index: {}]   ;;  %s5517_s4 = inlined_call_operand.vmem [shape: f32[2,8,128], index: 4, kind: output, shape index: {0}]   ;;  %s5518_s5 = inlined_call_operand.vmem [shape: f32[2,8,128], index: 5, kind: output, shape index: {1}]  }
   0x1   :  { %13 = vsyncpa [#allocation5 + $0x1], 0 }
   0x2   :  { %14 = vsyncpa [#allocation7], 0 }
   0x3   :  { %16 = vsyncpa [#allocation7 + $0x1], 0  ;;  %s4661_s18 = smov 0   ;;  %s4663_s19 = smov 0  }
   0x4   :  { %s4665_s20 = smov 0   ;;  %s4667_s21 = smov 0  }
   0x5 LB: > { %s4680_s22 = sadd.s32 4294967295, %s4622_s21   ;;  %s4683_s23 = sadd.s32 1, %s4622_s21   ;;  %s4622_s21 = sphi %s4667_s21, %s5528_s21   ;;  %s4618_s20 = sphi %s4665_s20, %s5527_s20   ;;  %s4614_s19 = sphi %s4663_s19, %s5526_s19   ;;  %s4610_s18 = sphi %s4661_s18, %s5525_s18  }
   0x6   : > { %s47_s24 = ssub.s32 %s4622_s21, %s4683_s23  ;;  %s50_s25 = sadd.s32 1, %s4618_s20 }
   0x7   : > { %p48_p0 = scmp.eq.s32.totalorder %s47_s24, 0  ;;  %p57_p1 = scmp.ne.s32.totalorder %s4618_s20, %s4614_s19 }
   0x8   : > { %p58_p2 = scmp.eq.s32.totalorder %s4622_s21, 0  ;;  %p63_p3 = scmp.ne.s32.totalorder %s4614_s19, %s4610_s18 }
   0x9   : > { %s4693_s26 = scalar_select %p48_p0, %s4618_s20, %s50_s25  }
   0xa   : > { %p59_p4 = por %p58_p2, %p57_p1  ;;  %p64_p5 = scmp.eq.s32.totalorder %s4680_s22, 0 }
   0xb   : > { %p4162_p6 = scmp.lt.s32.totalorder %s4622_s21, 2  ;;  %s4702_s28 = sand.u32 1, %s4618_s20  }
   0xc   : > { %p4697_p7 = por %p64_p5, %p63_p3  ;;  %s3785_s29 = sshll.u32 %s4702_s28, 8 }
   0xd   : > { %s4149_s30 = sshll.u32 %s4622_s21, 12  ;;  %s198_s9 = scalar_lea.vmem [#allocation4], %s3785_s29 }
   0xe   : > { %s5520_s27 = scalar_select %p4697_p7, 1, 0 }
   0xf   : > { %s4711_s8 = scalar_lea.hbm %s5514_s1, %s4149_s30  ;;  %s205_s10 = sshll.u32 %s198_s9, 4  ;;  %s4715_s10 = int_to_ptr.vmem [resolvable:$true] %s205_s10 }
  0x10   : > { %p4717_p8 = pnand %p4162_p6, %p59_p4  ;;  %s195_s12 = scalar_lea.sflag [#allocation5], %s4702_s28 }
  0x11   : > { %s4524_s13 = scalar_lea.hbm %s4711_s8, 4096  ;;  %s4529_s16 = scalar_lea.hbm %s5514_s1, 8192 }
  0x12   : > { %p4525_p10 = scmp.ne.s32.totalorder %s4711_s8, %s4524_s13  ;;  %p4526_p11 = pneg %p4717_p8 }
  0x13   : > { %p4530_p0 = scmp.lt.u32.totalorder %s4711_s8, %s5514_s1  ;;  %p4531_p1 = scmp.lt.u32.totalorder %s4529_s16, %s4524_s13 }
  0x14   : > { %p4527_p12 = pnand %p4526_p11, %p4525_p10  ;;  %p4533_p3 = scmp.lt.u32.totalorder %s4524_s13, %s4711_s8 }
  0x15   : > { %p4532_p2 = por %p4531_p1, %p4530_p0 }
  0x16   : > { %p4528_p13 = pneg %p4527_p12 }
  0x17   : > { %p4534_p4 = por %p4533_p3, %p4532_p2 }
  0x19   : > { %p4535_p5 = pnand %p4534_p4, %p4528_p13 }
  0x1b   : > { %4538 = shalt.err (!%p4535_p5)
}
  0x1c   : > { %s4539_s24 = scalar_lea.vmem %s4715_s10, 4096  ;;  %s4624_s25 = smov [#allocation4]  }
  0x1d   : > { %p4540_p6 = scmp.ne.s32.totalorder %s4715_s10, %s4539_s24  ;;  %s4544_s6 = sshll.u32 %s4624_s25, 4  ;;  %s4545_s6 = int_to_ptr.vmem [resolvable:$false] %s4544_s6 }
  0x1e   : > { %s4546_s7 = scalar_lea.vmem %s4545_s6, 8192  ;;  %p4547_p9 = scmp.lt.s32.totalorder %s4715_s10, %s4545_s6 }
  0x1f   : > { %p4542_p10 = pnand %p4540_p6, %p4526_p11  ;;  %p4548_p0 = scmp.lt.s32.totalorder %s4546_s7, %s4539_s24 }
  0x21   : > { %p4543_p12 = pneg %p4542_p10  ;;  %p4549_p1 = por %p4548_p0, %p4547_p9 }
  0x23   : > { %p4550_p2 = pnand %p4549_p1, %p4543_p12 }
  0x25   : > { %4553 = shalt.err (!%p4550_p2)
}
  0x26   : > { %s4625_s9 = smov 256   ;;  %s4626_s13 = smov 16  }
  0x27   : > { %4158 = dma.hbm_to_vmem [thread:$0]  (!%p4717_p8), %s4711_s8, 4096, %s4715_s10, %s195_s12, %s4625_s9, %s4625_s9, %s4626_s13  }
  0x28   : > { %p241_p9 = scmp.lt.s32.totalorder %s4622_s21, 3  ;;  %s4759_s16 = scalar_lea.hbm %s5515_s2, %s4149_s30 }
  0x29   : > { %p5522_p13 = scmp.ge.s32.totalorder %s4622_s21, 1  ;;  %s219_s18 = scalar_lea.vmem [#allocation6], %s3785_s29 }
  0x2a   : > { %s226_s24 = sshll.u32 %s219_s18, 4  ;;  %s216_s8 = scalar_lea.sflag [#allocation7], %s4702_s28  ;;  %s4769_s24 = int_to_ptr.vmem [resolvable:$true] %s226_s24 }
  0x2b   : > { %p4763_p3 = pnand %p5522_p13, %p241_p9  ;;  %s4554_s10 = scalar_lea.hbm %s4759_s16, 4096 }
  0x2c   : > { %p4555_p4 = scmp.ne.s32.totalorder %s4759_s16, %s4554_s10  ;;  %s4559_s12 = scalar_lea.hbm %s5515_s2, 8192 }
  0x2d   : > { %p4560_p10 = scmp.lt.u32.totalorder %s4759_s16, %s5515_s2  ;;  %p4561_p12 = scmp.lt.u32.totalorder %s4559_s12, %s4554_s10 }
  0x2e   : > { %p4557_p5 = pnand %p4555_p4, %p4526_p11  ;;  %p4563_p1 = scmp.lt.u32.totalorder %s4554_s10, %s4759_s16 }
  0x2f   : > { %p4562_p0 = por %p4561_p12, %p4560_p10 }
  0x30   : > { %p4558_p6 = pneg %p4557_p5 }
  0x31   : > { %p4564_p2 = por %p4563_p1, %p4562_p0 }
  0x33   : > { %p4565_p9 = pnand %p4564_p2, %p4558_p6 }
  0x35   : > { %4568 = shalt.err (!%p4565_p9)
}
  0x36   : > { %s4569_s29 = scalar_lea.vmem %s4769_s24, 4096  ;;  %s4627_s7 = smov [#allocation6]  }
  0x37   : > { %p4570_p13 = scmp.ne.s32.totalorder %s4769_s24, %s4569_s29  ;;  %s4574_s14 = sshll.u32 %s4627_s7, 4  ;;  %s4575_s14 = int_to_ptr.vmem [resolvable:$false] %s4574_s14 }
  0x38   : > { %s4576_s15 = scalar_lea.vmem %s4575_s14, 8192  ;;  %p4577_p7 = scmp.lt.s32.totalorder %s4769_s24, %s4575_s14 }
  0x39   : > { %p4572_p4 = pnand %p4570_p13, %p4526_p11  ;;  %p4578_p10 = scmp.lt.s32.totalorder %s4576_s15, %s4569_s29 }
  0x3b   : > { %p4573_p5 = pneg %p4572_p4  ;;  %p4579_p12 = por %p4578_p10, %p4577_p7 }
  0x3d   : > { %p4580_p0 = pnand %p4579_p12, %p4573_p5 }
  0x3f   : > { %4583 = shalt.err (!%p4580_p0)
}
  0x40   : > { %4161 = dma.hbm_to_vmem [thread:$0]  (!%p4717_p8), %s4759_s16, 4096, %s4769_s24, %s216_s8, %s4625_s9, %s4625_s9, %s4626_s13  }
  0x41   : > { %245 = sbr.rel (%p4763_p3) target bundleno = 2743 (0xab7), region = 36  ;;  %s247_s18 = sand.u32 (!%p4763_p3), 1, %s4614_s19  }
  0x42   : > { %s3792_s10 = sshll.u32 (!%p4763_p3), %s247_s18, 8  ;;  %s248_s21 = scalar_lea.sflag (!%p4763_p3), [#allocation5], %s247_s18 }
  0x43   : > { %s4803_s30 = scalar_lea.vmem (!%p4763_p3), [#allocation4], %s3792_s10  ;;  %p5524_p7 = scmp.ne.s32.totalorder (!%p4763_p3), %s5520_s27, 0 }
  0x48   : > { %4601 = dma.done.wait (%p5524_p7), %s248_s21, 4096  }
  0x49   : > { %4603 = vsyncadd (%p5524_p7), %s248_s21, 4294963200  ;;  %s257_s28 = scalar_lea.sflag [#allocation7], %s247_s18  ;;  %s4809_s11 = scalar_lea.vmem [#allocation6], %s3792_s10 }
  0x4a   : > { %4605 = dma.done.wait (%p5524_p7), %s257_s28, 4096  }
  0x4b   : > { %4607 = vsyncadd (%p5524_p7), %s257_s28, 4294963200  ;;  %p299_p8 = scmp.lt.s32.totalorder %s4680_s22, 1  ;;  %p3797_p11 = scmp.ne.s32.totalorder %s4680_s22, 0 }
  0x4c   : > { %v4200_v0 = vld [vmem:[%s4803_s30 + $0x4] ss:$16 sps:$4 sm:$0xff] (!%p3797_p11)   ;;  %v4202_v1 = vld [vmem:[%s4803_s30 + $0xc] ss:$16 sps:$4 sm:$0xff] (!%p3797_p11)   ;;  %v4628_v2 = vmov (!%p3797_p11), 0   ;;  %v358_v37 = vlaneseq (!%p3797_p11) }
  0x4d   : > { %s300_s9 = scalar_select %p299_p8, %s4680_s22, 1 }
  0x4e   : > { %315 = sbr.rel (%p3797_p11) target bundleno = 353 (0x161), region = 48  ;;  %594 = vmatprep.mubr.bf16.mxu0 (!%p3797_p11), %v4628_v2  ;;  %667 = vmatprep.mubr.bf16.mxu1 (!%p3797_p11), %v4628_v2  ;;  %v4204_v3 = vld [vmem:[%s4803_s30] ss:$16 sps:$4 sm:$0xff] (!%p3797_p11)   ;;  %v4205_v4 = vld [vmem:[%s4803_s30 + $0x8] ss:$16 sps:$4 sm:$0xff] (!%p3797_p11)   ;;  %v359_v38 = vshrl.u32 (!%p3797_p11), %v358_v37, 7 }
  0x4f   : > { %s3794_s13 = sshll.u32 %s300_s9, 2  ;;  %s3795_s16 = sshll.u32 %s300_s9, 3  ;;  %562 = vmatprep.subr.bf16.mxu0 (!%p3797_p11), %v4200_v0  ;;  %635 = vmatprep.subr.bf16.mxu1 (!%p3797_p11), %v4202_v1  ;;  %v4206_v5 = vld [vmem:[%s4803_s30 + $0x24] ss:$16 sps:$4 sm:$0xff] (!%p3797_p11)   ;;  %v4208_v6 = vld [vmem:[%s4803_s30 + $0x2c] ss:$16 sps:$4 sm:$0xff] (!%p3797_p11)  }
  0x50   : > { %s4820_s8 = scalar_lea.vmem %s5516_s3, %s3794_s13  ;;  %s4825_s6 = scalar_lea.vmem %s5517_s4, %s3795_s16  ;;  %563 = vmatpush1.bf16.msra.mxu0 (!%p3797_p11), %v4204_v3  ;;  %636 = vmatpush1.bf16.msra.mxu1 (!%p3797_p11), %v4205_v4  ;;  %v4210_v7 = vld [vmem:[%s4803_s30 + $0x20] ss:$16 sps:$4 sm:$0xff] (!%p3797_p11)   ;;  %v4211_v8 = vld [vmem:[%s4803_s30 + $0x28] ss:$16 sps:$4 sm:$0xff] (!%p3797_p11)   ;;  %v4212_v9 = vld [vmem:[%s4803_s30 + $0x44] ss:$16 sps:$4 sm:$0xff] (!%p3797_p11)  }
  0x51   : > { %s4830_s27 = scalar_lea.vmem %s5518_s5, %s3795_s16  ;;  %564 = vmatprep.subr.bf16.mxu0 (!%p3797_p11), %v4206_v5  ;;  %637 = vmatprep.subr.bf16.mxu1 (!%p3797_p11), %v4208_v6  ;;  %v4214_v10 = vld [vmem:[%s4803_s30 + $0x4c] ss:$16 sps:$4 sm:$0xff] (!%p3797_p11)   ;;  %v4216_v11 = vld [vmem:[%s4803_s30 + $0x40] ss:$16 sps:$4 sm:$0xff] (!%p3797_p11)   ;;  %v4217_v12 = vld [vmem:[%s4803_s30 + $0x48] ss:$16 sps:$4 sm:$0xff] (!%p3797_p11)  }
  0x52   : > { %v4218_v13 = vld [vmem:[%s4803_s30 + $0x64] ss:$16 sps:$4 sm:$0xff] (!%p3797_p11)   ;;  %v4220_v14 = vld [vmem:[%s4803_s30 + $0x6c] ss:$16 sps:$4 sm:$0xff] (!%p3797_p11)   ;;  %v4222_v15 = vld [vmem:[%s4803_s30 + $0x60] ss:$16 sps:$4 sm:$0xff] (!%p3797_p11)  }
  0x53   : > { %v4223_v16 = vld [vmem:[%s4803_s30 + $0x68] ss:$16 sps:$4 sm:$0xff] (!%p3797_p11)   ;;  %v4224_v17 = vld [vmem:[%s4803_s30 + $0x84] ss:$16 sps:$4 sm:$0xff] (!%p3797_p11)   ;;  %v4226_v18 = vld [vmem:[%s4803_s30 + $0x8c] ss:$16 sps:$4 sm:$0xff] (!%p3797_p11)  }
  0x54   : > { %565 = vmatpush1.bf16.msra.mxu0 (!%p3797_p11), %v4210_v7  ;;  %638 = vmatpush1.bf16.msra.mxu1 (!%p3797_p11), %v4211_v8  ;;  %v4228_v19 = vld [vmem:[%s4803_s30 + $0x80] ss:$16 sps:$4 sm:$0xff] (!%p3797_p11)   ;;  %v4229_v20 = vld [vmem:[%s4803_s30 + $0x88] ss:$16 sps:$4 sm:$0xff] (!%p3797_p11)   ;;  %v4230_v21 = vld [vmem:[%s4803_s30 + $0xa4] ss:$16 sps:$4 sm:$0xff] (!%p3797_p11)  }
  0x55   : > { %566 = vmatprep.subr.bf16.mxu0 %v4212_v9  ;;  %639 = vmatprep.subr.bf16.mxu1 %v4214_v10  ;;  %v4232_v22 = vld [vmem:[%s4803_s30 + $0xac] ss:$16 sps:$4 sm:$0xff]   ;;  %v4234_v23 = vld [vmem:[%s4803_s30 + $0xa0] ss:$16 sps:$4 sm:$0xff]   ;;  %v4235_v24 = vld [vmem:[%s4803_s30 + $0xa8] ss:$16 sps:$4 sm:$0xff]  }
  0x56   : > { %v4236_v25 = vld [vmem:[%s4803_s30 + $0xc4] ss:$16 sps:$4 sm:$0xff]   ;;  %v4238_v26 = vld [vmem:[%s4803_s30 + $0xcc] ss:$16 sps:$4 sm:$0xff]   ;;  %v4240_v27 = vld [vmem:[%s4803_s30 + $0xc0] ss:$16 sps:$4 sm:$0xff]  }
  0x57   : > { %v4241_v28 = vld [vmem:[%s4803_s30 + $0xc8] ss:$16 sps:$4 sm:$0xff]   ;;  %v4242_v29 = vld [vmem:[%s4803_s30 + $0xe4] ss:$16 sps:$4 sm:$0xff]   ;;  %v4244_v30 = vld [vmem:[%s4803_s30 + $0xec] ss:$16 sps:$4 sm:$0xff]  }
  0x58   : > { %567 = vmatpush1.bf16.msra.mxu0 %v4216_v11  ;;  %640 = vmatpush1.bf16.msra.mxu1 %v4217_v12  ;;  %v4246_v31 = vld [vmem:[%s4803_s30 + $0xe0] ss:$16 sps:$4 sm:$0xff]   ;;  %v4247_v32 = vld [vmem:[%s4803_s30 + $0xe8] ss:$16 sps:$4 sm:$0xff]   ;;  %v360_v39 = vsub.s32 0, %v359_v38  ;;  %v368_v40 = vsub.s32 2, %v359_v38 }
  0x59   : > { %568 = vmatprep.subr.bf16.mxu0 %v4218_v13  ;;  %641 = vmatprep.subr.bf16.mxu1 %v4220_v14  ;;  %v4248_v33 = vld [vmem:[%s5513_s0] sm:$0xff]   ;;  %v4249_v34 = vld [vmem:[%s5513_s0 + $0x8] sm:$0xff]   ;;  %v4250_v35 = vld [vmem:[%s5513_s0 + $0x10] sm:$0xff]   ;;  %v364_v42 = vsub.s32 1, %v359_v38  ;;  %v372_v43 = vsub.s32 3, %v359_v38 }
  0x5a   : > { %v4251_v36 = vld [vmem:[%s5513_s0 + $0x18] sm:$0xff]   ;;  %v356_v41 = vld [vmem:[%s4820_s8] sm:$0xf] }
  0x5b   : > { %v4886_v44 = vrot.slane %v356_v41, %v360_v39  ;;  %v4888_v45 = vrot.slane %v356_v41, %v368_v40  ;;  %v4890_v46 = vrot.slane %v356_v41, %v364_v42  ;;  %v4892_v47 = vrot.slane %v356_v41, %v372_v43 }
  0x5c   : > { %569 = vmatpush1.bf16.msra.mxu0 %v4222_v15  ;;  %642 = vmatpush1.bf16.msra.mxu1 %v4223_v16 }
  0x5d   : > { %570 = vmatprep.subr.bf16.mxu0 %v4224_v17  ;;  %643 = vmatprep.subr.bf16.mxu1 %v4226_v18 }
  0x60   : > { %571 = vmatpush1.bf16.msra.mxu0 %v4228_v19  ;;  %644 = vmatpush1.bf16.msra.mxu1 %v4229_v20 }
  0x61   : > { %572 = vmatprep.subr.bf16.mxu0 %v4230_v21  ;;  %645 = vmatprep.subr.bf16.mxu1 %v4232_v22 }
  0x64   : > { %573 = vmatpush1.bf16.msra.mxu0 %v4234_v23  ;;  %646 = vmatpush1.bf16.msra.mxu1 %v4235_v24 }
  0x65   : > { %574 = vmatprep.subr.bf16.mxu0 %v4236_v25  ;;  %647 = vmatprep.subr.bf16.mxu1 %v4238_v26 }
  0x68   : > { %575 = vmatpush1.bf16.msra.mxu0 %v4240_v27  ;;  %648 = vmatpush1.bf16.msra.mxu1 %v4241_v28 }
  0x69   : > { %576 = vmatprep.subr.bf16.mxu0 %v4242_v29  ;;  %649 = vmatprep.subr.bf16.mxu1 %v4244_v30 }
  0x6c   : > { %577 = vmatpush1.bf16.msra.mxu0 %v4246_v31  ;;  %650 = vmatpush1.bf16.msra.mxu1 %v4247_v32 }
  0x6f   : > { %595 = vmatmul.mubr.bf16.vlgmr.msra.gmra.mrb[0].mxu0 %v4248_v33  ;;  %668 = vmatmul.mubr.bf16.vlgmr.msra.gmra.mrb[0].mxu1 %v4248_v33 }
  0x70   : > { %604 = vmatprep.mubr.bf16.mxu0 %v4628_v2  ;;  %677 = vmatprep.mubr.bf16.mxu1 %v4628_v2 }
  0x77   : > { %605 = vmatmul.mubr.bf16.gmra.mrb[4].mxu0 %v4249_v34  ;;  %678 = vmatmul.mubr.bf16.gmra.mrb[4].mxu1 %v4249_v34 }
  0x78   : > { %614 = vmatprep.mubr.bf16.mxu0 %v4628_v2  ;;  %687 = vmatprep.mubr.bf16.mxu1 %v4628_v2 }
  0x7f   : > { %615 = vmatmul.mubr.bf16.gmra.mrb[8].mxu0 %v4250_v35  ;;  %688 = vmatmul.mubr.bf16.gmra.mrb[8].mxu1 %v4250_v35 }
  0x80   : > { %624 = vmatprep.mubr.bf16.mxu0 %v4628_v2  ;;  %697 = vmatprep.mubr.bf16.mxu1 %v4628_v2 }
  0x87   : > { %625 = vmatmul.mubr.bf16.gmra.mrb[12].mxu0 %v4251_v36  ;;  %698 = vmatmul.mubr.bf16.gmra.mrb[12].mxu1 %v4251_v36 }
 0x142   : > { %v596_v48 = vpop.f32.mrb[0].mxu0  ;;  %v669_v49 = vpop.f32.mrb[0].mxu1 }
 0x143   : > { %v597_v50 = vadd.f32 %v596_v48, %v4886_v44  ;;  %v670_v51 = vadd.f32 %v669_v49, %v4888_v45  ;;  %v598_v52 = vpop.f32.mrb[1].mxu0  ;;  %v671_v53 = vpop.f32.mrb[1].mxu1 }
 0x144   : > { %v599_v54 = vadd.f32 %v598_v52, %v4890_v46  ;;  %v672_v55 = vadd.f32 %v671_v53, %v4892_v47  ;;  %v600_v56 = vpop.f32.mrb[2].mxu0  ;;  %v673_v57 = vpop.f32.mrb[2].mxu1 }
 0x145   : > { %708 = vst [vmem:[#allocation3] sm:$0xff] %v597_v50  ;;  %710 = vst [vmem:[#allocation3 + $0x10] sm:$0xff] %v670_v51  ;;  %v601_v58 = vadd.f32 %v600_v56, %v4886_v44  ;;  %v674_v59 = vadd.f32 %v673_v57, %v4888_v45  ;;  %v602_v60 = vpop.f32.mrb[3].mxu0  ;;  %v675_v61 = vpop.f32.mrb[3].mxu1 }
 0x146   : > { %709 = vst [vmem:[#allocation3 + $0x8] sm:$0xff] %v599_v54  ;;  %711 = vst [vmem:[#allocation3 + $0x18] sm:$0xff] %v672_v55  ;;  %v603_v62 = vadd.f32 %v602_v60, %v4890_v46  ;;  %v676_v63 = vadd.f32 %v675_v61, %v4892_v47 }
 0x147   : > { %712 = vst [vmem:[#allocation3 + $0x20] sm:$0xff] %v601_v58  ;;  %714 = vst [vmem:[#allocation3 + $0x30] sm:$0xff] %v674_v59 }
 0x148   : > { %713 = vst [vmem:[#allocation3 + $0x28] sm:$0xff] %v603_v62  ;;  %715 = vst [vmem:[#allocation3 + $0x38] sm:$0xff] %v676_v63 }
 0x14a   : > { %v606_v0 = vpop.f32.mrb[4].mxu0  ;;  %v679_v1 = vpop.f32.mrb[4].mxu1 }
 0x14b   : > { %v607_v2 = vadd.f32 %v606_v0, %v4886_v44  ;;  %v680_v3 = vadd.f32 %v679_v1, %v4888_v45  ;;  %v608_v4 = vpop.f32.mrb[5].mxu0  ;;  %v681_v5 = vpop.f32.mrb[5].mxu1 }
 0x14c   : > { %v609_v6 = vadd.f32 %v608_v4, %v4890_v46  ;;  %v682_v7 = vadd.f32 %v681_v5, %v4892_v47  ;;  %v610_v8 = vpop.f32.mrb[6].mxu0  ;;  %v683_v9 = vpop.f32.mrb[6].mxu1 }
 0x14d   : > { %716 = vst [vmem:[#allocation3 + $0x40] sm:$0xff] %v607_v2  ;;  %718 = vst [vmem:[#allocation3 + $0x50] sm:$0xff] %v680_v3  ;;  %v611_v10 = vadd.f32 %v610_v8, %v4886_v44  ;;  %v684_v11 = vadd.f32 %v683_v9, %v4888_v45  ;;  %v612_v12 = vpop.f32.mrb[7].mxu0  ;;  %v685_v13 = vpop.f32.mrb[7].mxu1 }
 0x14e   : > { %717 = vst [vmem:[#allocation3 + $0x48] sm:$0xff] %v609_v6  ;;  %719 = vst [vmem:[#allocation3 + $0x58] sm:$0xff] %v682_v7  ;;  %v613_v14 = vadd.f32 %v612_v12, %v4890_v46  ;;  %v686_v15 = vadd.f32 %v685_v13, %v4892_v47 }
 0x14f   : > { %720 = vst [vmem:[#allocation3 + $0x60] sm:$0xff] %v611_v10  ;;  %722 = vst [vmem:[#allocation3 + $0x70] sm:$0xff] %v684_v11 }
 0x150   : > { %721 = vst [vmem:[#allocation3 + $0x68] sm:$0xff] %v613_v14  ;;  %723 = vst [vmem:[#allocation3 + $0x78] sm:$0xff] %v686_v15 }
 0x152   : > { %v616_v16 = vpop.f32.mrb[8].mxu0  ;;  %v689_v17 = vpop.f32.mrb[8].mxu1 }
 0x153   : > { %v617_v18 = vadd.f32 %v616_v16, %v4886_v44  ;;  %v690_v19 = vadd.f32 %v689_v17, %v4888_v45  ;;  %v618_v20 = vpop.f32.mrb[9].mxu0  ;;  %v691_v21 = vpop.f32.mrb[9].mxu1 }
 0x154   : > { %v619_v22 = vadd.f32 %v618_v20, %v4890_v46  ;;  %v692_v23 = vadd.f32 %v691_v21, %v4892_v47  ;;  %v620_v24 = vpop.f32.mrb[10].mxu0  ;;  %v693_v25 = vpop.f32.mrb[10].mxu1 }
 0x155   : > { %724 = vst [vmem:[#allocation3 + $0x80] sm:$0xff] %v617_v18  ;;  %726 = vst [vmem:[#allocation3 + $0x90] sm:$0xff] %v690_v19  ;;  %v621_v26 = vadd.f32 %v620_v24, %v4886_v44  ;;  %v694_v27 = vadd.f32 %v693_v25, %v4888_v45  ;;  %v622_v28 = vpop.f32.mrb[11].mxu0  ;;  %v695_v29 = vpop.f32.mrb[11].mxu1 }
 0x156   : > { %725 = vst [vmem:[#allocation3 + $0x88] sm:$0xff] %v619_v22  ;;  %727 = vst [vmem:[#allocation3 + $0x98] sm:$0xff] %v692_v23  ;;  %v623_v30 = vadd.f32 %v622_v28, %v4890_v46  ;;  %v696_v31 = vadd.f32 %v695_v29, %v4892_v47 }
 0x157   : > { %728 = vst [vmem:[#allocation3 + $0xa0] sm:$0xff] %v621_v26  ;;  %730 = vst [vmem:[#allocation3 + $0xb0] sm:$0xff] %v694_v27 }
 0x158   : > { %729 = vst [vmem:[#allocation3 + $0xa8] sm:$0xff] %v623_v30  ;;  %731 = vst [vmem:[#allocation3 + $0xb8] sm:$0xff] %v696_v31 }
 0x15a   : > { %v626_v32 = vpop.f32.mrb[12].mxu0  ;;  %v699_v33 = vpop.f32.mrb[12].mxu1 }
 0x15b   : > { %v627_v34 = vadd.f32 %v626_v32, %v4886_v44  ;;  %v700_v35 = vadd.f32 %v699_v33, %v4888_v45  ;;  %v628_v36 = vpop.f32.mrb[13].mxu0  ;;  %v701_v37 = vpop.f32.mrb[13].mxu1 }
 0x15c   : > { %v629_v38 = vadd.f32 %v628_v36, %v4890_v46  ;;  %v702_v39 = vadd.f32 %v701_v37, %v4892_v47  ;;  %v630_v40 = vpop.f32.mrb[14].mxu0  ;;  %v703_v41 = vpop.f32.mrb[14].mxu1 }
 0x15d   : > { %732 = vst [vmem:[#allocation3 + $0xc0] sm:$0xff] %v627_v34  ;;  %734 = vst [vmem:[#allocation3 + $0xd0] sm:$0xff] %v700_v35  ;;  %v631_v42 = vadd.f32 %v630_v40, %v4886_v44  ;;  %v704_v43 = vadd.f32 %v703_v41, %v4888_v45  ;;  %v632_v48 = vpop.f32.mrb[15].mxu0  ;;  %v705_v49 = vpop.f32.mrb[15].mxu1 }
 0x15e   : > { %733 = vst [vmem:[#allocation3 + $0xc8] sm:$0xff] %v629_v38  ;;  %735 = vst [vmem:[#allocation3 + $0xd8] sm:$0xff] %v702_v39  ;;  %v633_v50 = vadd.f32 %v632_v48, %v4890_v46  ;;  %v706_v51 = vadd.f32 %v705_v49, %v4892_v47 }
 0x15f   : > { %736 = vst [vmem:[#allocation3 + $0xe0] sm:$0xff] %v631_v42  ;;  %738 = vst [vmem:[#allocation3 + $0xf0] sm:$0xff] %v704_v43 }
 0x160   : > { %737 = vst [vmem:[#allocation3 + $0xe8] sm:$0xff] %v633_v50  ;;  %739 = vst [vmem:[#allocation3 + $0xf8] sm:$0xff] %v706_v51 }
 0x161 PF: > { %p3834_p3 = scmp.le.s32.totalorder %s4680_s22, 0 }
 0x162   : > { %v4252_v44 = vld [vmem:[%s4803_s30 + $0x4] ss:$16 sps:$4 sm:$0xff] (!%p3834_p3)   ;;  %v4254_v45 = vld [vmem:[%s4803_s30 + $0xc] ss:$16 sps:$4 sm:$0xff] (!%p3834_p3)   ;;  %v4629_v46 = vmov (!%p3834_p3), 0   ;;  %v790_v29 = vlaneseq (!%p3834_p3) }
 0x163   : > { %743 = sbr.rel (%p3834_p3) target bundleno = 630 (0x276), region = 52  ;;  %1002 = vmatprep.mubr.bf16.mxu0 (!%p3834_p3), %v4629_v46  ;;  %1075 = vmatprep.mubr.bf16.mxu1 (!%p3834_p3), %v4629_v46  ;;  %v4256_v47 = vld [vmem:[%s4803_s30] ss:$16 sps:$4 sm:$0xff] (!%p3834_p3)   ;;  %v4257_v52 = vld [vmem:[%s4803_s30 + $0x8] ss:$16 sps:$4 sm:$0xff] (!%p3834_p3)  }
 0x164   : > { %970 = vmatprep.subr.bf16.mxu0 (!%p3834_p3), %v4252_v44  ;;  %1043 = vmatprep.subr.bf16.mxu1 (!%p3834_p3), %v4254_v45  ;;  %v4258_v53 = vld [vmem:[%s4803_s30 + $0x24] ss:$16 sps:$4 sm:$0xff] (!%p3834_p3)   ;;  %v4260_v54 = vld [vmem:[%s4803_s30 + $0x2c] ss:$16 sps:$4 sm:$0xff] (!%p3834_p3)   ;;  %v4262_v55 = vld [vmem:[%s4803_s30 + $0x20] ss:$16 sps:$4 sm:$0xff] (!%p3834_p3)  }
 0x165   : > { %971 = vmatpush1.bf16.msra.mxu0 (!%p3834_p3), %v4256_v47  ;;  %1044 = vmatpush1.bf16.msra.mxu1 (!%p3834_p3), %v4257_v52  ;;  %v4263_v56 = vld [vmem:[%s4803_s30 + $0x28] ss:$16 sps:$4 sm:$0xff] (!%p3834_p3)   ;;  %v4264_v57 = vld [vmem:[%s4803_s30 + $0x44] ss:$16 sps:$4 sm:$0xff] (!%p3834_p3)   ;;  %v4266_v58 = vld [vmem:[%s4803_s30 + $0x4c] ss:$16 sps:$4 sm:$0xff] (!%p3834_p3)  }
 0x166   : > { %972 = vmatprep.subr.bf16.mxu0 (!%p3834_p3), %v4258_v53  ;;  %1045 = vmatprep.subr.bf16.mxu1 (!%p3834_p3), %v4260_v54  ;;  %v4268_v59 = vld [vmem:[%s4803_s30 + $0x40] ss:$16 sps:$4 sm:$0xff] (!%p3834_p3)   ;;  %v4269_v60 = vld [vmem:[%s4803_s30 + $0x48] ss:$16 sps:$4 sm:$0xff] (!%p3834_p3)   ;;  %v4270_v61 = vld [vmem:[%s4803_s30 + $0x64] ss:$16 sps:$4 sm:$0xff] (!%p3834_p3)  }
 0x167   : > { %v4272_v62 = vld [vmem:[%s4803_s30 + $0x6c] ss:$16 sps:$4 sm:$0xff] (!%p3834_p3)   ;;  %v4274_v63 = vld [vmem:[%s4803_s30 + $0x60] ss:$16 sps:$4 sm:$0xff] (!%p3834_p3)   ;;  %v4275_v0 = vld [vmem:[%s4803_s30 + $0x68] ss:$16 sps:$4 sm:$0xff] (!%p3834_p3)  }
 0x168   : > { %v4276_v1 = vld [vmem:[%s4803_s30 + $0x84] ss:$16 sps:$4 sm:$0xff] (!%p3834_p3)   ;;  %v4278_v2 = vld [vmem:[%s4803_s30 + $0x8c] ss:$16 sps:$4 sm:$0xff] (!%p3834_p3)   ;;  %v4280_v3 = vld [vmem:[%s4803_s30 + $0x80] ss:$16 sps:$4 sm:$0xff] (!%p3834_p3)  }
 0x169   : > { %973 = vmatpush1.bf16.msra.mxu0 (!%p3834_p3), %v4262_v55  ;;  %1046 = vmatpush1.bf16.msra.mxu1 (!%p3834_p3), %v4263_v56  ;;  %v4281_v4 = vld [vmem:[%s4803_s30 + $0x88] ss:$16 sps:$4 sm:$0xff] (!%p3834_p3)   ;;  %v4282_v5 = vld [vmem:[%s4803_s30 + $0xa4] ss:$16 sps:$4 sm:$0xff] (!%p3834_p3)   ;;  %v4284_v6 = vld [vmem:[%s4803_s30 + $0xac] ss:$16 sps:$4 sm:$0xff] (!%p3834_p3)  }
 0x16a   : > { %974 = vmatprep.subr.bf16.mxu0 %v4264_v57  ;;  %1047 = vmatprep.subr.bf16.mxu1 %v4266_v58  ;;  %v4286_v7 = vld [vmem:[%s4803_s30 + $0xa0] ss:$16 sps:$4 sm:$0xff]   ;;  %v4287_v8 = vld [vmem:[%s4803_s30 + $0xa8] ss:$16 sps:$4 sm:$0xff]   ;;  %v4288_v9 = vld [vmem:[%s4803_s30 + $0xc4] ss:$16 sps:$4 sm:$0xff]  }
 0x16b   : > { %v4290_v10 = vld [vmem:[%s4803_s30 + $0xcc] ss:$16 sps:$4 sm:$0xff]   ;;  %v4292_v11 = vld [vmem:[%s4803_s30 + $0xc0] ss:$16 sps:$4 sm:$0xff]   ;;  %v4293_v12 = vld [vmem:[%s4803_s30 + $0xc8] ss:$16 sps:$4 sm:$0xff]  }
 0x16c   : > { %v4294_v13 = vld [vmem:[%s4803_s30 + $0xe4] ss:$16 sps:$4 sm:$0xff]   ;;  %v4296_v14 = vld [vmem:[%s4803_s30 + $0xec] ss:$16 sps:$4 sm:$0xff]   ;;  %v4298_v15 = vld [vmem:[%s4803_s30 + $0xe0] ss:$16 sps:$4 sm:$0xff]  }
 0x16d   : > { %975 = vmatpush1.bf16.msra.mxu0 %v4268_v59  ;;  %1048 = vmatpush1.bf16.msra.mxu1 %v4269_v60  ;;  %v4299_v16 = vld [vmem:[%s4803_s30 + $0xe8] ss:$16 sps:$4 sm:$0xff]   ;;  %v744_v17 = vld [vmem:[#allocation2] sm:$0xff]  ;;  %v746_v20 = vld [vmem:[#allocation2 + $0x10] sm:$0xff]  ;;  %v791_v30 = vshrl.u32 %v790_v29, 7 }
 0x16e   : > { %976 = vmatprep.subr.bf16.mxu0 %v4270_v61  ;;  %1049 = vmatprep.subr.bf16.mxu1 %v4272_v62  ;;  %v745_v18 = vld [vmem:[#allocation2 + $0x8] sm:$0xff]  ;;  %v747_v21 = vld [vmem:[#allocation2 + $0x18] sm:$0xff]  ;;  %v748_v23 = vld [vmem:[#allocation2 + $0x20] sm:$0xff] }
 0x16f   : > { %v752_v19 = vpack.c.bf16 %v745_v18, %v744_v17  ;;  %v753_v22 = vpack.c.bf16 %v747_v21, %v746_v20  ;;  %v749_v24 = vld [vmem:[#allocation2 + $0x28] sm:$0xff]  ;;  %v750_v26 = vld [vmem:[#allocation2 + $0x30] sm:$0xff]  ;;  %v751_v27 = vld [vmem:[#allocation2 + $0x38] sm:$0xff]  ;;  %v792_v31 = vsub.s32 0, %v791_v30  ;;  %v800_v32 = vsub.s32 2, %v791_v30 }
 0x170   : > { %v754_v25 = vpack.c.bf16 %v749_v24, %v748_v23  ;;  %v755_v28 = vpack.c.bf16 %v751_v27, %v750_v26  ;;  %v788_v33 = vld [vmem:[%s4820_s8] sm:$0xf]  ;;  %v796_v34 = vsub.s32 1, %v791_v30  ;;  %v804_v35 = vsub.s32 3, %v791_v30 }
 0x171   : > { %977 = vmatpush1.bf16.msra.mxu0 %v4274_v63  ;;  %1050 = vmatpush1.bf16.msra.mxu1 %v4275_v0  ;;  %v4968_v36 = vrot.slane %v788_v33, %v792_v31  ;;  %v4970_v37 = vrot.slane %v788_v33, %v800_v32 }
 0x172   : > { %978 = vmatprep.subr.bf16.mxu0 %v4276_v1  ;;  %1051 = vmatprep.subr.bf16.mxu1 %v4278_v2  ;;  %v4972_v38 = vrot.slane %v788_v33, %v796_v34  ;;  %v4974_v39 = vrot.slane %v788_v33, %v804_v35 }
 0x175   : > { %979 = vmatpush1.bf16.msra.mxu0 %v4280_v3  ;;  %1052 = vmatpush1.bf16.msra.mxu1 %v4281_v4 }
 0x176   : > { %980 = vmatprep.subr.bf16.mxu0 %v4282_v5  ;;  %1053 = vmatprep.subr.bf16.mxu1 %v4284_v6 }
 0x179   : > { %981 = vmatpush1.bf16.msra.mxu0 %v4286_v7  ;;  %1054 = vmatpush1.bf16.msra.mxu1 %v4287_v8 }
 0x17a   : > { %982 = vmatprep.subr.bf16.mxu0 %v4288_v9  ;;  %1055 = vmatprep.subr.bf16.mxu1 %v4290_v10 }
 0x17d   : > { %983 = vmatpush1.bf16.msra.mxu0 %v4292_v11  ;;  %1056 = vmatpush1.bf16.msra.mxu1 %v4293_v12 }
 0x17e   : > { %984 = vmatprep.subr.bf16.mxu0 %v4294_v13  ;;  %1057 = vmatprep.subr.bf16.mxu1 %v4296_v14 }
 0x181   : > { %985 = vmatpush1.bf16.msra.mxu0 %v4298_v15  ;;  %1058 = vmatpush1.bf16.msra.mxu1 %v4299_v16 }
 0x184   : > { %1003 = vmatmul.mubr.bf16.vlgmr.msra.gmra.mrb[0].mxu0 %v752_v19  ;;  %1076 = vmatmul.mubr.bf16.vlgmr.msra.gmra.mrb[0].mxu1 %v752_v19 }
 0x185   : > { %1012 = vmatprep.mubr.bf16.mxu0 %v4629_v46  ;;  %1085 = vmatprep.mubr.bf16.mxu1 %v4629_v46 }
 0x18c   : > { %1013 = vmatmul.mubr.bf16.gmra.mrb[4].mxu0 %v753_v22  ;;  %1086 = vmatmul.mubr.bf16.gmra.mrb[4].mxu1 %v753_v22 }
 0x18d   : > { %1022 = vmatprep.mubr.bf16.mxu0 %v4629_v46  ;;  %1095 = vmatprep.mubr.bf16.mxu1 %v4629_v46 }
 0x194   : > { %1023 = vmatmul.mubr.bf16.gmra.mrb[8].mxu0 %v754_v25  ;;  %1096 = vmatmul.mubr.bf16.gmra.mrb[8].mxu1 %v754_v25 }
 0x195   : > { %1032 = vmatprep.mubr.bf16.mxu0 %v4629_v46  ;;  %1105 = vmatprep.mubr.bf16.mxu1 %v4629_v46 }
 0x19c   : > { %1033 = vmatmul.mubr.bf16.gmra.mrb[12].mxu0 %v755_v28  ;;  %1106 = vmatmul.mubr.bf16.gmra.mrb[12].mxu1 %v755_v28 }
 0x257   : > { %v1004_v40 = vpop.f32.mrb[0].mxu0  ;;  %v1077_v41 = vpop.f32.mrb[0].mxu1 }
 0x258   : > { %v1005_v42 = vadd.f32 %v1004_v40, %v4968_v36  ;;  %v1078_v43 = vadd.f32 %v1077_v41, %v4970_v37  ;;  %v1006_v48 = vpop.f32.mrb[1].mxu0  ;;  %v1079_v49 = vpop.f32.mrb[1].mxu1 }
 0x259   : > { %v1007_v50 = vadd.f32 %v1006_v48, %v4972_v38  ;;  %v1080_v51 = vadd.f32 %v1079_v49, %v4974_v39  ;;  %v1008_v44 = vpop.f32.mrb[2].mxu0  ;;  %v1081_v45 = vpop.f32.mrb[2].mxu1 }
 0x25a   : > { %1116 = vst [vmem:[#allocation3] sm:$0xff] %v1005_v42  ;;  %1118 = vst [vmem:[#allocation3 + $0x10] sm:$0xff] %v1078_v43  ;;  %v1009_v46 = vadd.f32 %v1008_v44, %v4968_v36  ;;  %v1082_v47 = vadd.f32 %v1081_v45, %v4970_v37  ;;  %v1010_v52 = vpop.f32.mrb[3].mxu0  ;;  %v1083_v53 = vpop.f32.mrb[3].mxu1 }
 0x25b   : > { %1117 = vst [vmem:[#allocation3 + $0x8] sm:$0xff] %v1007_v50  ;;  %1119 = vst [vmem:[#allocation3 + $0x18] sm:$0xff] %v1080_v51  ;;  %v1011_v54 = vadd.f32 %v1010_v52, %v4972_v38  ;;  %v1084_v55 = vadd.f32 %v1083_v53, %v4974_v39 }
 0x25c   : > { %1120 = vst [vmem:[#allocation3 + $0x20] sm:$0xff] %v1009_v46  ;;  %1122 = vst [vmem:[#allocation3 + $0x30] sm:$0xff] %v1082_v47 }
 0x25d   : > { %1121 = vst [vmem:[#allocation3 + $0x28] sm:$0xff] %v1011_v54  ;;  %1123 = vst [vmem:[#allocation3 + $0x38] sm:$0xff] %v1084_v55 }
 0x25f   : > { %v1014_v56 = vpop.f32.mrb[4].mxu0  ;;  %v1087_v57 = vpop.f32.mrb[4].mxu1 }
 0x260   : > { %v1015_v58 = vadd.f32 %v1014_v56, %v4968_v36  ;;  %v1088_v59 = vadd.f32 %v1087_v57, %v4970_v37  ;;  %v1016_v60 = vpop.f32.mrb[5].mxu0  ;;  %v1089_v61 = vpop.f32.mrb[5].mxu1 }
 0x261   : > { %v1017_v62 = vadd.f32 %v1016_v60, %v4972_v38  ;;  %v1090_v63 = vadd.f32 %v1089_v61, %v4974_v39  ;;  %v1018_v0 = vpop.f32.mrb[6].mxu0  ;;  %v1091_v1 = vpop.f32.mrb[6].mxu1 }
 0x262   : > { %1124 = vst [vmem:[#allocation3 + $0x40] sm:$0xff] %v1015_v58  ;;  %1126 = vst [vmem:[#allocation3 + $0x50] sm:$0xff] %v1088_v59  ;;  %v1019_v2 = vadd.f32 %v1018_v0, %v4968_v36  ;;  %v1092_v3 = vadd.f32 %v1091_v1, %v4970_v37  ;;  %v1020_v4 = vpop.f32.mrb[7].mxu0  ;;  %v1093_v5 = vpop.f32.mrb[7].mxu1 }
 0x263   : > { %1125 = vst [vmem:[#allocation3 + $0x48] sm:$0xff] %v1017_v62  ;;  %1127 = vst [vmem:[#allocation3 + $0x58] sm:$0xff] %v1090_v63  ;;  %v1021_v6 = vadd.f32 %v1020_v4, %v4972_v38  ;;  %v1094_v7 = vadd.f32 %v1093_v5, %v4974_v39 }
 0x264   : > { %1128 = vst [vmem:[#allocation3 + $0x60] sm:$0xff] %v1019_v2  ;;  %1130 = vst [vmem:[#allocation3 + $0x70] sm:$0xff] %v1092_v3 }
 0x265   : > { %1129 = vst [vmem:[#allocation3 + $0x68] sm:$0xff] %v1021_v6  ;;  %1131 = vst [vmem:[#allocation3 + $0x78] sm:$0xff] %v1094_v7 }
 0x267   : > { %v1024_v8 = vpop.f32.mrb[8].mxu0  ;;  %v1097_v9 = vpop.f32.mrb[8].mxu1 }
 0x268   : > { %v1025_v10 = vadd.f32 %v1024_v8, %v4968_v36  ;;  %v1098_v11 = vadd.f32 %v1097_v9, %v4970_v37  ;;  %v1026_v12 = vpop.f32.mrb[9].mxu0  ;;  %v1099_v13 = vpop.f32.mrb[9].mxu1 }
 0x269   : > { %v1027_v14 = vadd.f32 %v1026_v12, %v4972_v38  ;;  %v1100_v15 = vadd.f32 %v1099_v13, %v4974_v39  ;;  %v1028_v16 = vpop.f32.mrb[10].mxu0  ;;  %v1101_v17 = vpop.f32.mrb[10].mxu1 }
 0x26a   : > { %1132 = vst [vmem:[#allocation3 + $0x80] sm:$0xff] %v1025_v10  ;;  %1134 = vst [vmem:[#allocation3 + $0x90] sm:$0xff] %v1098_v11  ;;  %v1029_v18 = vadd.f32 %v1028_v16, %v4968_v36  ;;  %v1102_v19 = vadd.f32 %v1101_v17, %v4970_v37  ;;  %v1030_v20 = vpop.f32.mrb[11].mxu0  ;;  %v1103_v21 = vpop.f32.mrb[11].mxu1 }
 0x26b   : > { %1133 = vst [vmem:[#allocation3 + $0x88] sm:$0xff] %v1027_v14  ;;  %1135 = vst [vmem:[#allocation3 + $0x98] sm:$0xff] %v1100_v15  ;;  %v1031_v22 = vadd.f32 %v1030_v20, %v4972_v38  ;;  %v1104_v23 = vadd.f32 %v1103_v21, %v4974_v39 }
 0x26c   : > { %1136 = vst [vmem:[#allocation3 + $0xa0] sm:$0xff] %v1029_v18  ;;  %1138 = vst [vmem:[#allocation3 + $0xb0] sm:$0xff] %v1102_v19 }
 0x26d   : > { %1137 = vst [vmem:[#allocation3 + $0xa8] sm:$0xff] %v1031_v22  ;;  %1139 = vst [vmem:[#allocation3 + $0xb8] sm:$0xff] %v1104_v23 }
 0x26f   : > { %v1034_v24 = vpop.f32.mrb[12].mxu0  ;;  %v1107_v25 = vpop.f32.mrb[12].mxu1 }
 0x270   : > { %v1035_v26 = vadd.f32 %v1034_v24, %v4968_v36  ;;  %v1108_v27 = vadd.f32 %v1107_v25, %v4970_v37  ;;  %v1036_v28 = vpop.f32.mrb[13].mxu0  ;;  %v1109_v29 = vpop.f32.mrb[13].mxu1 }
 0x271   : > { %v1037_v30 = vadd.f32 %v1036_v28, %v4972_v38  ;;  %v1110_v31 = vadd.f32 %v1109_v29, %v4974_v39  ;;  %v1038_v32 = vpop.f32.mrb[14].mxu0  ;;  %v1111_v33 = vpop.f32.mrb[14].mxu1 }
 0x272   : > { %1140 = vst [vmem:[#allocation3 + $0xc0] sm:$0xff] %v1035_v26  ;;  %1142 = vst [vmem:[#allocation3 + $0xd0] sm:$0xff] %v1108_v27  ;;  %v1039_v34 = vadd.f32 %v1038_v32, %v4968_v36  ;;  %v1112_v35 = vadd.f32 %v1111_v33, %v4970_v37  ;;  %v1040_v40 = vpop.f32.mrb[15].mxu0  ;;  %v1113_v41 = vpop.f32.mrb[15].mxu1 }
 0x273   : > { %1141 = vst [vmem:[#allocation3 + $0xc8] sm:$0xff] %v1037_v30  ;;  %1143 = vst [vmem:[#allocation3 + $0xd8] sm:$0xff] %v1110_v31  ;;  %v1041_v42 = vadd.f32 %v1040_v40, %v4972_v38  ;;  %v1114_v43 = vadd.f32 %v1113_v41, %v4974_v39 }
 0x274   : > { %1144 = vst [vmem:[#allocation3 + $0xe0] sm:$0xff] %v1039_v34  ;;  %1146 = vst [vmem:[#allocation3 + $0xf0] sm:$0xff] %v1112_v35 }
 0x275   : > { %1145 = vst [vmem:[#allocation3 + $0xe8] sm:$0xff] %v1041_v42  ;;  %1147 = vst [vmem:[#allocation3 + $0xf8] sm:$0xff] %v1114_v43 }
 0x276 PF: > { %v5009_v36 = vld [vmem:[%s4809_s11 + $0x4] ss:$16 sps:$4 sm:$0xff]   ;;  %v5012_v37 = vld [vmem:[%s4809_s11] ss:$16 sps:$4 sm:$0xff]   ;;  %v4630_v38 = vmov 0   ;;  %v1152_v10 = vld [vmem:[#allocation3 + $0x8] sm:$0xff] }
 0x277   : > { %1379 = vmatprep.mubr.bf16.mxu0 %v4630_v38  ;;  %1420 = vmatprep.mubr.bf16.mxu1 %v4630_v38  ;;  %v5018_v39 = vld [vmem:[%s4809_s11 + $0x24] ss:$16 sps:$4 sm:$0xff]   ;;  %v5022_v48 = vld [vmem:[%s4809_s11 + $0x20] ss:$16 sps:$4 sm:$0xff]   ;;  %v5029_v50 = vld [vmem:[%s4809_s11 + $0xc] ss:$16 sps:$4 sm:$0xff]  }
 0x278   : > { %1347 = vmatprep.subr.bf16.mxu0 %v5009_v36  ;;  %v5026_v49 = vld [vmem:[%s4809_s11 + $0x44] ss:$16 sps:$4 sm:$0xff]   ;;  %v5032_v51 = vld [vmem:[%s4809_s11 + $0x8] ss:$16 sps:$4 sm:$0xff]   ;;  %v5036_v44 = vld [vmem:[%s4809_s11 + $0x40] ss:$16 sps:$4 sm:$0xff]   ;;  %1388 = vmatprep.subr.bf16.mxu1 %v5029_v50 }
 0x279   : > { %1348 = vmatpush1.bf16.msra.mxu0 %v5012_v37  ;;  %v5041_v45 = vld [vmem:[%s4809_s11 + $0x64] ss:$16 sps:$4 sm:$0xff]   ;;  %1389 = vmatpush1.bf16.msra.mxu1 %v5032_v51  ;;  %v5045_v46 = vld [vmem:[%s4809_s11 + $0x2c] ss:$16 sps:$4 sm:$0xff]   ;;  %v5048_v47 = vld [vmem:[%s4809_s11 + $0x28] ss:$16 sps:$4 sm:$0xff]  }
 0x27a   : > { %1349 = vmatprep.subr.bf16.mxu0 %v5018_v39  ;;  %1390 = vmatprep.subr.bf16.mxu1 %v5045_v46  ;;  %v5053_v52 = vld [vmem:[%s4809_s11 + $0x60] ss:$16 sps:$4 sm:$0xff]   ;;  %v5056_v53 = vld [vmem:[%s4809_s11 + $0x84] ss:$16 sps:$4 sm:$0xff]   ;;  %v5059_v54 = vld [vmem:[%s4809_s11 + $0x4c] ss:$16 sps:$4 sm:$0xff]  }
 0x27b   : > { %v5064_v55 = vld [vmem:[%s4809_s11 + $0x48] ss:$16 sps:$4 sm:$0xff]   ;;  %v5068_v56 = vld [vmem:[%s4809_s11 + $0x6c] ss:$16 sps:$4 sm:$0xff]   ;;  %v5072_v57 = vld [vmem:[%s4809_s11 + $0x80] ss:$16 sps:$4 sm:$0xff]  }
 0x27c   : > { %v5076_v58 = vld [vmem:[%s4809_s11 + $0xa4] ss:$16 sps:$4 sm:$0xff]   ;;  %v5080_v59 = vld [vmem:[%s4809_s11 + $0x68] ss:$16 sps:$4 sm:$0xff]   ;;  %v5084_v60 = vld [vmem:[%s4809_s11 + $0x8c] ss:$16 sps:$4 sm:$0xff]  }
 0x27d   : > { %1350 = vmatpush1.bf16.msra.mxu0 %v5022_v48  ;;  %1391 = vmatpush1.bf16.msra.mxu1 %v5048_v47  ;;  %v5088_v61 = vld [vmem:[%s4809_s11 + $0xa0] ss:$16 sps:$4 sm:$0xff]   ;;  %v5091_v62 = vld [vmem:[%s4809_s11 + $0xc4] ss:$16 sps:$4 sm:$0xff]   ;;  %v5096_v63 = vld [vmem:[%s4809_s11 + $0x88] ss:$16 sps:$4 sm:$0xff]  }
 0x27e   : > { %1351 = vmatprep.subr.bf16.mxu0 %v5026_v49  ;;  %1392 = vmatprep.subr.bf16.mxu1 %v5059_v54  ;;  %v5099_v0 = vld [vmem:[%s4809_s11 + $0xc0] ss:$16 sps:$4 sm:$0xff]   ;;  %v5103_v1 = vld [vmem:[%s4809_s11 + $0xac] ss:$16 sps:$4 sm:$0xff]   ;;  %v5106_v2 = vld [vmem:[%s4809_s11 + $0xe4] ss:$16 sps:$4 sm:$0xff]  }
 0x27f   : > { %v5109_v3 = vld [vmem:[%s4809_s11 + $0xa8] ss:$16 sps:$4 sm:$0xff]   ;;  %v5113_v4 = vld [vmem:[%s4809_s11 + $0xcc] ss:$16 sps:$4 sm:$0xff]   ;;  %v5118_v5 = vld [vmem:[%s4809_s11 + $0xe0] ss:$16 sps:$4 sm:$0xff]  }
 0x280   : > { %v5122_v6 = vld [vmem:[%s4809_s11 + $0xc8] ss:$16 sps:$4 sm:$0xff]   ;;  %v5126_v7 = vld [vmem:[%s4809_s11 + $0xec] ss:$16 sps:$4 sm:$0xff]   ;;  %v1151_v9 = vld [vmem:[#allocation3] sm:$0xff] }
 0x281   : > { %1352 = vmatpush1.bf16.msra.mxu0 %v5036_v44  ;;  %1393 = vmatpush1.bf16.msra.mxu1 %v5064_v55  ;;  %v5134_v8 = vld [vmem:[%s4809_s11 + $0xe8] ss:$16 sps:$4 sm:$0xff]   ;;  %v1153_v19 = vld [vmem:[#allocation3 + $0x10] sm:$0xff] }
 0x282   : > { %1353 = vmatprep.subr.bf16.mxu0 %v5041_v45  ;;  %1394 = vmatprep.subr.bf16.mxu1 %v5068_v56  ;;  %v1154_v25 = vld [vmem:[#allocation3 + $0x18] sm:$0xff] }
 0x285   : > { %1354 = vmatpush1.bf16.msra.mxu0 %v5053_v52  ;;  %1395 = vmatpush1.bf16.msra.mxu1 %v5080_v59 }
 0x286   : > { %1355 = vmatprep.subr.bf16.mxu0 %v5056_v53  ;;  %1396 = vmatprep.subr.bf16.mxu1 %v5084_v60 }
 0x289   : > { %1356 = vmatpush1.bf16.msra.mxu0 %v5072_v57  ;;  %1397 = vmatpush1.bf16.msra.mxu1 %v5096_v63 }
 0x28a   : > { %1357 = vmatprep.subr.bf16.mxu0 %v5076_v58  ;;  %1398 = vmatprep.subr.bf16.mxu1 %v5103_v1 }
 0x28d   : > { %1358 = vmatpush1.bf16.msra.mxu0 %v5088_v61  ;;  %1399 = vmatpush1.bf16.msra.mxu1 %v5109_v3 }
 0x28e   : > { %1359 = vmatprep.subr.bf16.mxu0 %v5091_v62  ;;  %1400 = vmatprep.subr.bf16.mxu1 %v5113_v4 }
 0x291   : > { %1360 = vmatpush1.bf16.msra.mxu0 %v5099_v0  ;;  %1401 = vmatpush1.bf16.msra.mxu1 %v5122_v6 }
 0x292   : > { %1361 = vmatprep.subr.bf16.mxu0 %v5106_v2  ;;  %1402 = vmatprep.subr.bf16.mxu1 %v5126_v7 }
 0x295   : > { %1362 = vmatpush1.bf16.msra.mxu0 %v5118_v5  ;;  %1403 = vmatpush1.bf16.msra.mxu1 %v5134_v8 }
 0x296   : > { %1658 = vmatprep.subr.bf16.mxu0 %v5009_v36  ;;  %1699 = vmatprep.subr.bf16.mxu1 %v5029_v50 }
 0x298   : > { %1380 = vmatmul.mubr.bf16.vlgmr.msra.gmra.mrb[0].mxu0 %v4630_v38  ;;  %1421 = vmatmul.mubr.bf16.vlgmr.msra.gmra.mrb[0].mxu1 %v4630_v38 }
 0x299   : > { %1659 = vmatpush1.bf16.msra.mxu0 %v5012_v37  ;;  %1690 = vmatprep.mubr.bf16.mxu0 %v4630_v38 }
 0x29a   : > { %1660 = vmatprep.subr.bf16.mxu0 %v5018_v39  ;;  %1700 = vmatpush1.bf16.msra.mxu1 %v5032_v51 }
 0x29b   : > { %1701 = vmatprep.subr.bf16.mxu1 %v5045_v46  ;;  %1731 = vmatprep.mubr.bf16.mxu1 %v4630_v38 }
 0x29d   : > { %1661 = vmatpush1.bf16.msra.mxu0 %v5022_v48 }
 0x29e   : > { %1662 = vmatprep.subr.bf16.mxu0 %v5026_v49  ;;  %1702 = vmatpush1.bf16.msra.mxu1 %v5048_v47 }
 0x29f   : > { %1703 = vmatprep.subr.bf16.mxu1 %v5059_v54 }
 0x2a1   : > { %1663 = vmatpush1.bf16.msra.mxu0 %v5036_v44 }
 0x2a2   : > { %1664 = vmatprep.subr.bf16.mxu0 %v5041_v45  ;;  %1704 = vmatpush1.bf16.msra.mxu1 %v5064_v55 }
 0x2a3   : > { %1705 = vmatprep.subr.bf16.mxu1 %v5068_v56 }
 0x2a5   : > { %1665 = vmatpush1.bf16.msra.mxu0 %v5053_v52 }
 0x2a6   : > { %1666 = vmatprep.subr.bf16.mxu0 %v5056_v53  ;;  %1706 = vmatpush1.bf16.msra.mxu1 %v5080_v59 }
 0x2a7   : > { %1707 = vmatprep.subr.bf16.mxu1 %v5084_v60 }
 0x2a9   : > { %1667 = vmatpush1.bf16.msra.mxu0 %v5072_v57 }
 0x2aa   : > { %1668 = vmatprep.subr.bf16.mxu0 %v5076_v58  ;;  %1708 = vmatpush1.bf16.msra.mxu1 %v5096_v63 }
 0x2ab   : > { %1709 = vmatprep.subr.bf16.mxu1 %v5103_v1 }
 0x2ad   : > { %1669 = vmatpush1.bf16.msra.mxu0 %v5088_v61 }
 0x2ae   : > { %1670 = vmatprep.subr.bf16.mxu0 %v5091_v62  ;;  %1710 = vmatpush1.bf16.msra.mxu1 %v5109_v3 }
 0x2af   : > { %1711 = vmatprep.subr.bf16.mxu1 %v5113_v4 }
 0x2b1   : > { %1671 = vmatpush1.bf16.msra.mxu0 %v5099_v0 }
 0x2b2   : > { %1672 = vmatprep.subr.bf16.mxu0 %v5106_v2  ;;  %1712 = vmatpush1.bf16.msra.mxu1 %v5122_v6 }
 0x2b3   : > { %1713 = vmatprep.subr.bf16.mxu1 %v5126_v7 }
 0x2b5   : > { %1673 = vmatpush1.bf16.msra.mxu0 %v5118_v5 }
 0x2b6   : > { %1970 = vmatprep.subr.bf16.mxu0 %v5009_v36  ;;  %1714 = vmatpush1.bf16.msra.mxu1 %v5134_v8 }
 0x2b7   : > { %2011 = vmatprep.subr.bf16.mxu1 %v5029_v50 }
 0x36b   : > { %v1381_v11 = vpop.f32.mrb[0].mxu0  ;;  %v1422_v20 = vpop.f32.mrb[0].mxu1 }
 0x36c   : > { %v1429_v12 = vadd.f32 %v1381_v11, %v1151_v9  ;;  %v1383_v13 = vpop.f32.mrb[1].mxu0  ;;  %v1424_v21 = vpop.f32.mrb[1].mxu1  ;;  %v1431_v22 = vadd.f32 %v1422_v20, %v1153_v19 }
 0x36d   : > { %v1430_v14 = vadd.f32 %v1383_v13, %v1152_v10  ;;  %v1385_v15 = vpop.f32.mrb[2].mxu0  ;;  %v1426_v23 = vpop.f32.mrb[2].mxu1  ;;  %v1432_v27 = vadd.f32 %v1424_v21, %v1154_v25  ;;  %v1461_v13 = vld [vmem:[#allocation3 + $0x20] sm:$0xff] }
 0x36e   : > { %v3899_v16 = vmul.f32 -1.442695, %v1429_v12  ;;  %v1386_v17 = vpop.f32.mrb[3].mxu0  ;;  %v1427_v24 = vpop.f32.mrb[3].mxu1  ;;  %v3901_v26 = vmul.f32 -1.442695, %v1431_v22 }
 0x36f   : > { %v3900_v18 = vmul.f32 -1.442695, %v1430_v14  ;;  %v1462_v14 = vld [vmem:[#allocation3 + $0x28] sm:$0xff] }
 0x370   : > { %4396 = vpow2.f32 %v3899_v16 }
 0x371   : > { %4398 = vpow2.f32 %v3900_v18 }
 0x372   : > { %4400 = vpow2.f32 %v3901_v26 }
 0x373   : > { %4402 = vtanh.f32 %v1432_v27  ;;  %v1463_v27 = vld [vmem:[#allocation3 + $0x30] sm:$0xff] }
 0x37a   : > { %v4397_v28 = vpop.eup %4396 }
 0x37b   : > { %v4399_v29 = vpop.eup %4398  ;;  %v1442_v30 = vadd.f32 1.0, %v4397_v28  ;;  %v1464_v28 = vld [vmem:[#allocation3 + $0x38] sm:$0xff] }
 0x37c   : > { %v1443_v31 = vadd.f32 1.0, %v4399_v29  ;;  %v4401_v32 = vpop.eup %4400 }
 0x37d   : > { %4404 = vrcp.f32 %v1442_v30  ;;  %v4403_v33 = vpop.eup %4402  ;;  %v1444_v35 = vadd.f32 1.0, %v4401_v32 }
 0x37e   : > { %4406 = vrcp.f32 %v1443_v31 }
 0x37f   : > { %4408 = vrcp.f32 %v1444_v35 }
 0x387   : > { %v4405_v34 = vpop.eup %4404 }
 0x388   : > { %v4407_v40 = vpop.eup %4406  ;;  %v1453_v41 = vmul.f32 %v4405_v34, %v4403_v33 }
 0x389   : > { %v1452_v42 = vmul.f32 0.0, %v4407_v40  ;;  %v4409_v9 = vpop.eup %4408 }
 0x38b   : > { %v5176_v43 = vadd.f32 %v1453_v41, %v1452_v42 }
 0x38d   : > { %4410 = vtanh.f32 %v5176_v43 }
 0x397   : > { %v4411_v10 = vpop.eup %4410 }
 0x398   : > { %v1456_v11 = vmul.f32 %v4411_v10, %v4409_v9 }
 0x39a   : > { %1457 = vst [vmem:[#allocation2] sm:$0xff] %v1456_v11  ;;  %v1465_v12 = vpack.c.bf16 %v1456_v11, %v1456_v11 }
 0x39c   : > { %1691 = vmatmul.mubr.bf16.vlgmr.msra.gmra.mrb[4].mxu0 %v1465_v12  ;;  %1732 = vmatmul.mubr.bf16.vlgmr.msra.gmra.mrb[4].mxu1 %v1465_v12 }
 0x39d   : > { %1971 = vmatpush1.bf16.msra.mxu0 %v5012_v37  ;;  %2012 = vmatpush1.bf16.msra.mxu1 %v5032_v51 }
 0x39e   : > { %1972 = vmatprep.subr.bf16.mxu0 %v5018_v39  ;;  %2013 = vmatprep.subr.bf16.mxu1 %v5045_v46 }
 0x39f   : > { %2002 = vmatprep.mubr.bf16.mxu0 %v4630_v38  ;;  %2043 = vmatprep.mubr.bf16.mxu1 %v4630_v38 }
 0x3a1   : > { %1973 = vmatpush1.bf16.msra.mxu0 %v5022_v48  ;;  %2014 = vmatpush1.bf16.msra.mxu1 %v5048_v47 }
 0x3a2   : > { %1974 = vmatprep.subr.bf16.mxu0 %v5026_v49  ;;  %2015 = vmatprep.subr.bf16.mxu1 %v5059_v54 }
 0x3a5   : > { %1975 = vmatpush1.bf16.msra.mxu0 %v5036_v44  ;;  %2016 = vmatpush1.bf16.msra.mxu1 %v5064_v55 }
 0x3a6   : > { %1976 = vmatprep.subr.bf16.mxu0 %v5041_v45  ;;  %2017 = vmatprep.subr.bf16.mxu1 %v5068_v56 }
 0x3a9   : > { %1977 = vmatpush1.bf16.msra.mxu0 %v5053_v52  ;;  %2018 = vmatpush1.bf16.msra.mxu1 %v5080_v59 }
 0x3aa   : > { %1978 = vmatprep.subr.bf16.mxu0 %v5056_v53  ;;  %2019 = vmatprep.subr.bf16.mxu1 %v5084_v60 }
 0x3ad   : > { %1979 = vmatpush1.bf16.msra.mxu0 %v5072_v57  ;;  %2020 = vmatpush1.bf16.msra.mxu1 %v5096_v63 }
 0x3ae   : > { %1980 = vmatprep.subr.bf16.mxu0 %v5076_v58  ;;  %2021 = vmatprep.subr.bf16.mxu1 %v5103_v1 }
 0x3b1   : > { %1981 = vmatpush1.bf16.msra.mxu0 %v5088_v61  ;;  %2022 = vmatpush1.bf16.msra.mxu1 %v5109_v3 }
 0x3b2   : > { %1982 = vmatprep.subr.bf16.mxu0 %v5091_v62  ;;  %2023 = vmatprep.subr.bf16.mxu1 %v5113_v4 }
 0x3b5   : > { %1983 = vmatpush1.bf16.msra.mxu0 %v5099_v0  ;;  %2024 = vmatpush1.bf16.msra.mxu1 %v5122_v6 }
 0x3b6   : > { %1984 = vmatprep.subr.bf16.mxu0 %v5106_v2  ;;  %2025 = vmatprep.subr.bf16.mxu1 %v5126_v7 }
 0x3b9   : > { %1985 = vmatpush1.bf16.msra.mxu0 %v5118_v5  ;;  %2026 = vmatpush1.bf16.msra.mxu1 %v5134_v8 }
 0x3ba   : > { %2282 = vmatprep.subr.bf16.mxu0 %v5009_v36  ;;  %2323 = vmatprep.subr.bf16.mxu1 %v5029_v50 }
 0x46f   : > { %v1692_v15 = vpop.f32.mrb[4].mxu0  ;;  %v1733_v16 = vpop.f32.mrb[4].mxu1 }
 0x470   : > { %v1740_v17 = vadd.f32 %v1692_v15, %v1461_v13  ;;  %v1694_v18 = vpop.f32.mrb[5].mxu0  ;;  %v1735_v19 = vpop.f32.mrb[5].mxu1  ;;  %v1742_v36 = vadd.f32 %v1733_v16, %v1463_v27  ;;  %v5281_v27 = vld [vmem:[%s4809_s11 + $0x28] ss:$16 sps:$4 sm:$0xff]  }
 0x471   : > { %v1741_v20 = vadd.f32 %v1694_v18, %v1462_v14  ;;  %v1696_v21 = vpop.f32.mrb[6].mxu0  ;;  %v1737_v22 = vpop.f32.mrb[6].mxu1  ;;  %v1743_v50 = vadd.f32 %v1735_v19, %v1464_v28  ;;  %v5291_v28 = vld [vmem:[%s4809_s11 + $0x4c] ss:$16 sps:$4 sm:$0xff]  }
 0x472   : > { %v3934_v23 = vmul.f32 -1.442695, %v1740_v17  ;;  %v1697_v24 = vpop.f32.mrb[7].mxu0  ;;  %v1738_v25 = vpop.f32.mrb[7].mxu1  ;;  %v3936_v29 = vmul.f32 -1.442695, %v1742_v36 }
 0x473   : > { %v3935_v26 = vmul.f32 -1.442695, %v1741_v20  ;;  %v5256_v20 = vld [vmem:[%s4809_s11 + $0x4] ss:$16 sps:$4 sm:$0xff]   ;;  %v5259_v21 = vld [vmem:[%s4809_s11 + $0xc] ss:$16 sps:$4 sm:$0xff]  }
 0x474   : > { %4412 = vpow2.f32 %v3934_v23  ;;  %v5262_v22 = vld [vmem:[%s4809_s11] ss:$16 sps:$4 sm:$0xff]   ;;  %v5265_v23 = vld [vmem:[%s4809_s11 + $0x8] ss:$16 sps:$4 sm:$0xff]   ;;  %v5272_v24 = vld [vmem:[%s4809_s11 + $0x24] ss:$16 sps:$4 sm:$0xff]  }
 0x475   : > { %4414 = vpow2.f32 %v3935_v26  ;;  %v5275_v25 = vld [vmem:[%s4809_s11 + $0x2c] ss:$16 sps:$4 sm:$0xff]   ;;  %v5278_v26 = vld [vmem:[%s4809_s11 + $0x20] ss:$16 sps:$4 sm:$0xff]   ;;  %v5288_v36 = vld [vmem:[%s4809_s11 + $0x44] ss:$16 sps:$4 sm:$0xff]  }
 0x476   : > { %4416 = vtanh.f32 %v1743_v50  ;;  %v5294_v50 = vld [vmem:[%s4809_s11 + $0x40] ss:$16 sps:$4 sm:$0xff]  }
 0x477   : > { %4418 = vpow2.f32 %v3936_v29  ;;  %v5297_v29 = vld [vmem:[%s4809_s11 + $0x48] ss:$16 sps:$4 sm:$0xff]  }
 0x47e   : > { %v4413_v30 = vpop.eup %4412 }
 0x47f   : > { %v1753_v31 = vadd.f32 1.0, %v4413_v30  ;;  %v4415_v32 = vpop.eup %4414  ;;  %v5304_v30 = vld [vmem:[%s4809_s11 + $0x64] ss:$16 sps:$4 sm:$0xff]  }
 0x480   : > { %v1754_v33 = vadd.f32 1.0, %v4415_v32  ;;  %v4417_v34 = vpop.eup %4416  ;;  %v5310_v32 = vld [vmem:[%s4809_s11 + $0x60] ss:$16 sps:$4 sm:$0xff]  }
 0x481   : > { %4420 = vrcp.f32 %v1753_v31  ;;  %v4419_v35 = vpop.eup %4418  ;;  %v5307_v31 = vld [vmem:[%s4809_s11 + $0x6c] ss:$16 sps:$4 sm:$0xff]  }
 0x482   : > { %4422 = vrcp.f32 %v1754_v33  ;;  %v1755_v9 = vadd.f32 1.0, %v4419_v35  ;;  %v5313_v33 = vld [vmem:[%s4809_s11 + $0x68] ss:$16 sps:$4 sm:$0xff]   ;;  %v5323_v35 = vld [vmem:[%s4809_s11 + $0x8c] ss:$16 sps:$4 sm:$0xff]  }
 0x484   : > { %4424 = vrcp.f32 %v1755_v9  ;;  %v5339_v9 = vld [vmem:[%s4809_s11 + $0xa4] ss:$16 sps:$4 sm:$0xff]  }
 0x48b   : > { %v4421_v40 = vpop.eup %4420 }
 0x48c   : > { %v1764_v41 = vmul.f32 %v4421_v40, %v4417_v34  ;;  %v4423_v42 = vpop.eup %4422  ;;  %v5320_v34 = vld [vmem:[%s4809_s11 + $0x84] ss:$16 sps:$4 sm:$0xff]   ;;  %v5326_v40 = vld [vmem:[%s4809_s11 + $0x80] ss:$16 sps:$4 sm:$0xff]  }
 0x48d   : > { %v1763_v10 = vmul.f32 %v4423_v42, %v5176_v43  ;;  %v5336_v42 = vld [vmem:[%s4809_s11 + $0xa0] ss:$16 sps:$4 sm:$0xff]  }
 0x48e   : > { %v4425_v12 = vpop.eup %4424 }
 0x48f   : > { %v5214_v11 = vadd.f32 %v1764_v41, %v1763_v10  ;;  %v5329_v41 = vld [vmem:[%s4809_s11 + $0x88] ss:$16 sps:$4 sm:$0xff]  }
 0x490   : > { %v5342_v10 = vld [vmem:[%s4809_s11 + $0xa8] ss:$16 sps:$4 sm:$0xff]  }
 0x491   : > { %4426 = vtanh.f32 %v5214_v11 }
 0x49b   : > { %v4427_v13 = vpop.eup %4426 }
 0x49c   : > { %v1767_v14 = vmul.f32 %v4427_v13, %v4425_v12  ;;  %v5348_v12 = vld [vmem:[%s4809_s11 + $0xc4] ss:$16 sps:$4 sm:$0xff]   ;;  %v5352_v13 = vld [vmem:[%s4809_s11 + $0xcc] ss:$16 sps:$4 sm:$0xff]  }
 0x49e   : > { %1769 = vst [vmem:[#allocation2 + $0x8] sm:$0xff] %v1767_v14  ;;  %v1777_v15 = vpack.c.bf16 %v1767_v14, %v1767_v14  ;;  %v5358_v14 = vld [vmem:[%s4809_s11 + $0xc0] ss:$16 sps:$4 sm:$0xff]  }
 0x4a0   : > { %2003 = vmatmul.mubr.bf16.vlgmr.msra.gmra.mrb[8].mxu0 %v1777_v15  ;;  %2044 = vmatmul.mubr.bf16.vlgmr.msra.gmra.mrb[8].mxu1 %v1777_v15  ;;  %v5361_v15 = vld [vmem:[%s4809_s11 + $0xc8] ss:$16 sps:$4 sm:$0xff]  }
 0x4a1   : > { %2283 = vmatpush1.bf16.msra.mxu0 %v5012_v37  ;;  %2324 = vmatpush1.bf16.msra.mxu1 %v5032_v51  ;;  %v1773_v37 = vld [vmem:[#allocation3 + $0x40] sm:$0xff] }
 0x4a2   : > { %2284 = vmatprep.subr.bf16.mxu0 %v5018_v39  ;;  %2325 = vmatprep.subr.bf16.mxu1 %v5045_v46  ;;  %v1774_v39 = vld [vmem:[#allocation3 + $0x48] sm:$0xff] }
 0x4a3   : > { %2314 = vmatprep.mubr.bf16.mxu0 %v4630_v38  ;;  %2355 = vmatprep.mubr.bf16.mxu1 %v4630_v38 }
 0x4a5   : > { %2285 = vmatpush1.bf16.msra.mxu0 %v5022_v48  ;;  %2326 = vmatpush1.bf16.msra.mxu1 %v5048_v47 }
 0x4a6   : > { %2286 = vmatprep.subr.bf16.mxu0 %v5026_v49  ;;  %2327 = vmatprep.subr.bf16.mxu1 %v5059_v54 }
 0x4a9   : > { %2287 = vmatpush1.bf16.msra.mxu0 %v5036_v44  ;;  %2328 = vmatpush1.bf16.msra.mxu1 %v5064_v55 }
 0x4aa   : > { %2288 = vmatprep.subr.bf16.mxu0 %v5041_v45  ;;  %2329 = vmatprep.subr.bf16.mxu1 %v5068_v56 }
 0x4ad   : > { %2289 = vmatpush1.bf16.msra.mxu0 %v5053_v52  ;;  %2330 = vmatpush1.bf16.msra.mxu1 %v5080_v59  ;;  %v1776_v59 = vld [vmem:[#allocation3 + $0x58] sm:$0xff] }
 0x4ae   : > { %2290 = vmatprep.subr.bf16.mxu0 %v5056_v53  ;;  %2331 = vmatprep.subr.bf16.mxu1 %v5084_v60 }
 0x4b1   : > { %2291 = vmatpush1.bf16.msra.mxu0 %v5072_v57  ;;  %2332 = vmatpush1.bf16.msra.mxu1 %v5096_v63  ;;  %v1775_v57 = vld [vmem:[#allocation3 + $0x50] sm:$0xff] }
 0x4b2   : > { %2292 = vmatprep.subr.bf16.mxu0 %v5076_v58  ;;  %2333 = vmatprep.subr.bf16.mxu1 %v5103_v1 }
 0x4b5   : > { %2293 = vmatpush1.bf16.msra.mxu0 %v5088_v61  ;;  %2334 = vmatpush1.bf16.msra.mxu1 %v5109_v3 }
 0x4b6   : > { %2294 = vmatprep.subr.bf16.mxu0 %v5091_v62  ;;  %2335 = vmatprep.subr.bf16.mxu1 %v5113_v4 }
 0x4b9   : > { %2295 = vmatpush1.bf16.msra.mxu0 %v5099_v0  ;;  %2336 = vmatpush1.bf16.msra.mxu1 %v5122_v6 }
 0x4ba   : > { %2296 = vmatprep.subr.bf16.mxu0 %v5106_v2  ;;  %2337 = vmatprep.subr.bf16.mxu1 %v5126_v7 }
 0x4bd   : > { %2297 = vmatpush1.bf16.msra.mxu0 %v5118_v5  ;;  %2338 = vmatpush1.bf16.msra.mxu1 %v5134_v8 }
 0x4be   : > { %2594 = vmatprep.subr.bf16.mxu0 %v5256_v20  ;;  %2635 = vmatprep.subr.bf16.mxu1 %v5259_v21 }
 0x573   : > { %v2004_v48 = vpop.f32.mrb[8].mxu0  ;;  %v2045_v49 = vpop.f32.mrb[8].mxu1 }
 0x574   : > { %v2052_v51 = vadd.f32 %v2004_v48, %v1773_v37  ;;  %v2006_v44 = vpop.f32.mrb[9].mxu0  ;;  %v2047_v45 = vpop.f32.mrb[9].mxu1  ;;  %v2054_v58 = vadd.f32 %v2045_v49, %v1775_v57  ;;  %v5366_v37 = vld [vmem:[%s4809_s11 + $0xe4] ss:$16 sps:$4 sm:$0xff]   ;;  %v5374_v48 = vld [vmem:[%s4809_s11 + $0xe0] ss:$16 sps:$4 sm:$0xff]  }
 0x575   : > { %v2053_v46 = vadd.f32 %v2006_v44, %v1774_v39  ;;  %v2008_v47 = vpop.f32.mrb[10].mxu0  ;;  %v2049_v52 = vpop.f32.mrb[10].mxu1  ;;  %v2055_v60 = vadd.f32 %v2047_v45, %v1776_v59  ;;  %v5369_v39 = vld [vmem:[%s4809_s11 + $0xec] ss:$16 sps:$4 sm:$0xff]   ;;  %v5377_v49 = vld [vmem:[%s4809_s11 + $0xe8] ss:$16 sps:$4 sm:$0xff]  }
 0x576   : > { %v3969_v53 = vmul.f32 -1.442695, %v2052_v51  ;;  %v2009_v54 = vpop.f32.mrb[11].mxu0  ;;  %v2050_v55 = vpop.f32.mrb[11].mxu1  ;;  %v3971_v61 = vmul.f32 -1.442695, %v2054_v58 }
 0x577   : > { %v3970_v56 = vmul.f32 -1.442695, %v2053_v46  ;;  %v2085_v51 = vld [vmem:[#allocation3 + $0x60] sm:$0xff]  ;;  %v2086_v44 = vld [vmem:[#allocation3 + $0x68] sm:$0xff] }
 0x578   : > { %4428 = vpow2.f32 %v3969_v53 }
 0x579   : > { %4430 = vpow2.f32 %v3970_v56 }
 0x57a   : > { %4432 = vtanh.f32 %v2055_v60 }
 0x57b   : > { %4434 = vpow2.f32 %v3971_v61  ;;  %v2087_v61 = vld [vmem:[#allocation3 + $0x70] sm:$0xff] }
 0x582   : > { %v4429_v62 = vpop.eup %4428 }
 0x583   : > { %v2065_v63 = vadd.f32 1.0, %v4429_v62  ;;  %v4431_v0 = vpop.eup %4430 }
 0x584   : > { %v2066_v1 = vadd.f32 1.0, %v4431_v0  ;;  %v4433_v2 = vpop.eup %4432 }
 0x585   : > { %4436 = vrcp.f32 %v2065_v63  ;;  %v4435_v3 = vpop.eup %4434  ;;  %v2088_v63 = vld [vmem:[#allocation3 + $0x78] sm:$0xff] }
 0x586   : > { %4438 = vrcp.f32 %v2066_v1  ;;  %v2067_v7 = vadd.f32 1.0, %v4435_v3 }
 0x588   : > { %4440 = vrcp.f32 %v2067_v7 }
 0x58f   : > { %v4437_v4 = vpop.eup %4436 }
 0x590   : > { %v2076_v5 = vmul.f32 %v4437_v4, %v4433_v2  ;;  %v4439_v6 = vpop.eup %4438 }
 0x591   : > { %v2075_v8 = vmul.f32 %v4439_v6, %v5214_v11  ;;  %v5345_v11 = vld [vmem:[%s4809_s11 + $0xac] ss:$16 sps:$4 sm:$0xff]  }
 0x592   : > { %v4441_v16 = vpop.eup %4440 }
 0x593   : > { %v5250_v43 = vadd.f32 %v2076_v5, %v2075_v8 }
 0x595   : > { %4442 = vtanh.f32 %v5250_v43 }
 0x59f   : > { %v4443_v17 = vpop.eup %4442 }
 0x5a0   : > { %v2079_v18 = vmul.f32 %v4443_v17, %v4441_v16 }
 0x5a2   : > { %2081 = vst [vmem:[#allocation2 + $0x10] sm:$0xff] %v2079_v18  ;;  %v2089_v19 = vpack.c.bf16 %v2079_v18, %v2079_v18 }
 0x5a4   : > { %2315 = vmatmul.mubr.bf16.vlgmr.msra.gmra.mrb[12].mxu0 %v2089_v19  ;;  %2356 = vmatmul.mubr.bf16.vlgmr.msra.gmra.mrb[12].mxu1 %v2089_v19 }
 0x5a5   : > { %2626 = vmatprep.mubr.bf16.mxu0 %v4630_v38  ;;  %2667 = vmatprep.mubr.bf16.mxu1 %v4630_v38 }
 0x5a6   : > { %2595 = vmatpush1.bf16.msra.mxu0 %v5262_v22  ;;  %2636 = vmatpush1.bf16.msra.mxu1 %v5265_v23 }
 0x5a7   : > { %2596 = vmatprep.subr.bf16.mxu0 %v5272_v24  ;;  %2637 = vmatprep.subr.bf16.mxu1 %v5275_v25 }
 0x5aa   : > { %2597 = vmatpush1.bf16.msra.mxu0 %v5278_v26  ;;  %2638 = vmatpush1.bf16.msra.mxu1 %v5281_v27 }
 0x5ab   : > { %2598 = vmatprep.subr.bf16.mxu0 %v5288_v36  ;;  %2639 = vmatprep.subr.bf16.mxu1 %v5291_v28 }
 0x5ae   : > { %2599 = vmatpush1.bf16.msra.mxu0 %v5294_v50  ;;  %2640 = vmatpush1.bf16.msra.mxu1 %v5297_v29 }
 0x5af   : > { %2600 = vmatprep.subr.bf16.mxu0 %v5304_v30  ;;  %2641 = vmatprep.subr.bf16.mxu1 %v5307_v31 }
 0x5b2   : > { %2601 = vmatpush1.bf16.msra.mxu0 %v5310_v32  ;;  %2642 = vmatpush1.bf16.msra.mxu1 %v5313_v33 }
 0x5b3   : > { %2602 = vmatprep.subr.bf16.mxu0 %v5320_v34  ;;  %2643 = vmatprep.subr.bf16.mxu1 %v5323_v35 }
 0x5b6   : > { %2603 = vmatpush1.bf16.msra.mxu0 %v5326_v40  ;;  %2644 = vmatpush1.bf16.msra.mxu1 %v5329_v41 }
 0x5b7   : > { %2604 = vmatprep.subr.bf16.mxu0 %v5339_v9  ;;  %2645 = vmatprep.subr.bf16.mxu1 %v5345_v11 }
 0x5ba   : > { %2605 = vmatpush1.bf16.msra.mxu0 %v5336_v42  ;;  %2646 = vmatpush1.bf16.msra.mxu1 %v5342_v10 }
 0x5bb   : > { %2606 = vmatprep.subr.bf16.mxu0 %v5348_v12  ;;  %2647 = vmatprep.subr.bf16.mxu1 %v5352_v13 }
 0x5be   : > { %2607 = vmatpush1.bf16.msra.mxu0 %v5358_v14  ;;  %2648 = vmatpush1.bf16.msra.mxu1 %v5361_v15 }
 0x5bf   : > { %2608 = vmatprep.subr.bf16.mxu0 %v5366_v37  ;;  %2649 = vmatprep.subr.bf16.mxu1 %v5369_v39 }
 0x5c2   : > { %2609 = vmatpush1.bf16.msra.mxu0 %v5374_v48  ;;  %2650 = vmatpush1.bf16.msra.mxu1 %v5377_v49 }
 0x5c3   : > { %2906 = vmatprep.subr.bf16.mxu0 %v5256_v20  ;;  %2947 = vmatprep.subr.bf16.mxu1 %v5259_v21 }
 0x677   : > { %v2316_v45 = vpop.f32.mrb[12].mxu0  ;;  %v2357_v46 = vpop.f32.mrb[12].mxu1 }
 0x678   : > { %v2364_v47 = vadd.f32 %v2316_v45, %v2085_v51  ;;  %v2318_v52 = vpop.f32.mrb[13].mxu0  ;;  %v2359_v53 = vpop.f32.mrb[13].mxu1  ;;  %v2366_v62 = vadd.f32 %v2357_v46, %v2087_v61 }
 0x679   : > { %v2365_v54 = vadd.f32 %v2318_v52, %v2086_v44  ;;  %v2320_v55 = vpop.f32.mrb[14].mxu0  ;;  %v2361_v56 = vpop.f32.mrb[14].mxu1  ;;  %v2367_v0 = vadd.f32 %v2359_v53, %v2088_v63  ;;  %v2398_v52 = vld [vmem:[#allocation3 + $0x88] sm:$0xff] }
 0x67a   : > { %v4004_v57 = vmul.f32 -1.442695, %v2364_v47  ;;  %v2321_v58 = vpop.f32.mrb[15].mxu0  ;;  %v2362_v59 = vpop.f32.mrb[15].mxu1  ;;  %v4006_v1 = vmul.f32 -1.442695, %v2366_v62 }
 0x67b   : > { %v4005_v60 = vmul.f32 -1.442695, %v2365_v54 }
 0x67c   : > { %4444 = vpow2.f32 %v4004_v57 }
 0x67d   : > { %4446 = vpow2.f32 %v4005_v60 }
 0x67e   : > { %4448 = vtanh.f32 %v2367_v0 }
 0x67f   : > { %4450 = vpow2.f32 %v4006_v1  ;;  %v2399_v1 = vld [vmem:[#allocation3 + $0x90] sm:$0xff] }
 0x686   : > { %v4445_v2 = vpop.eup %4444 }
 0x687   : > { %v2377_v3 = vadd.f32 1.0, %v4445_v2  ;;  %v4447_v4 = vpop.eup %4446 }
 0x688   : > { %v2378_v5 = vadd.f32 1.0, %v4447_v4  ;;  %v4449_v6 = vpop.eup %4448 }
 0x689   : > { %4452 = vrcp.f32 %v2377_v3  ;;  %v4451_v7 = vpop.eup %4450  ;;  %v2400_v3 = vld [vmem:[#allocation3 + $0x98] sm:$0xff] }
 0x68a   : > { %4454 = vrcp.f32 %v2378_v5  ;;  %v2379_v18 = vadd.f32 1.0, %v4451_v7 }
 0x68c   : > { %4456 = vrcp.f32 %v2379_v18 }
 0x693   : > { %v4453_v8 = vpop.eup %4452 }
 0x694   : > { %v2388_v16 = vmul.f32 %v4453_v8, %v4449_v6  ;;  %v4455_v17 = vpop.eup %4454 }
 0x695   : > { %v2387_v19 = vmul.f32 %v4455_v17, %v5250_v43  ;;  %v2397_v43 = vld [vmem:[#allocation3 + $0x80] sm:$0xff] }
 0x696   : > { %v4457_v44 = vpop.eup %4456 }
 0x697   : > { %v5386_v51 = vadd.f32 %v2388_v16, %v2387_v19 }
 0x699   : > { %4458 = vtanh.f32 %v5386_v51 }
 0x6a3   : > { %v4459_v45 = vpop.eup %4458 }
 0x6a4   : > { %v2391_v46 = vmul.f32 %v4459_v45, %v4457_v44 }
 0x6a6   : > { %2393 = vst [vmem:[#allocation2 + $0x18] sm:$0xff] %v2391_v46  ;;  %v2401_v47 = vpack.c.bf16 %v2391_v46, %v2391_v46 }
 0x6a8   : > { %2627 = vmatmul.mubr.bf16.vlgmr.msra.gmra.mrb[16].mxu0 %v2401_v47  ;;  %2668 = vmatmul.mubr.bf16.vlgmr.msra.gmra.mrb[16].mxu1 %v2401_v47 }
 0x6a9   : > { %2907 = vmatpush1.bf16.msra.mxu0 %v5262_v22  ;;  %2948 = vmatpush1.bf16.msra.mxu1 %v5265_v23 }
 0x6aa   : > { %2908 = vmatprep.subr.bf16.mxu0 %v5272_v24  ;;  %2949 = vmatprep.subr.bf16.mxu1 %v5275_v25 }
 0x6ab   : > { %2938 = vmatprep.mubr.bf16.mxu0 %v4630_v38  ;;  %2979 = vmatprep.mubr.bf16.mxu1 %v4630_v38 }
 0x6ad   : > { %2909 = vmatpush1.bf16.msra.mxu0 %v5278_v26  ;;  %2950 = vmatpush1.bf16.msra.mxu1 %v5281_v27 }
 0x6ae   : > { %2910 = vmatprep.subr.bf16.mxu0 %v5288_v36  ;;  %2951 = vmatprep.subr.bf16.mxu1 %v5291_v28 }
 0x6b1   : > { %2911 = vmatpush1.bf16.msra.mxu0 %v5294_v50  ;;  %2952 = vmatpush1.bf16.msra.mxu1 %v5297_v29 }
 0x6b2   : > { %2912 = vmatprep.subr.bf16.mxu0 %v5304_v30  ;;  %2953 = vmatprep.subr.bf16.mxu1 %v5307_v31 }
 0x6b5   : > { %2913 = vmatpush1.bf16.msra.mxu0 %v5310_v32  ;;  %2954 = vmatpush1.bf16.msra.mxu1 %v5313_v33 }
 0x6b6   : > { %2914 = vmatprep.subr.bf16.mxu0 %v5320_v34  ;;  %2955 = vmatprep.subr.bf16.mxu1 %v5323_v35 }
 0x6b9   : > { %2915 = vmatpush1.bf16.msra.mxu0 %v5326_v40  ;;  %2956 = vmatpush1.bf16.msra.mxu1 %v5329_v41 }
 0x6ba   : > { %2916 = vmatprep.subr.bf16.mxu0 %v5339_v9  ;;  %2957 = vmatprep.subr.bf16.mxu1 %v5345_v11 }
 0x6bd   : > { %2917 = vmatpush1.bf16.msra.mxu0 %v5336_v42  ;;  %2958 = vmatpush1.bf16.msra.mxu1 %v5342_v10 }
 0x6be   : > { %2918 = vmatprep.subr.bf16.mxu0 %v5348_v12  ;;  %2959 = vmatprep.subr.bf16.mxu1 %v5352_v13 }
 0x6c1   : > { %2919 = vmatpush1.bf16.msra.mxu0 %v5358_v14  ;;  %2960 = vmatpush1.bf16.msra.mxu1 %v5361_v15 }
 0x6c2   : > { %2920 = vmatprep.subr.bf16.mxu0 %v5366_v37  ;;  %2961 = vmatprep.subr.bf16.mxu1 %v5369_v39 }
 0x6c5   : > { %2921 = vmatpush1.bf16.msra.mxu0 %v5374_v48  ;;  %2962 = vmatpush1.bf16.msra.mxu1 %v5377_v49 }
 0x6c6   : > { %3218 = vmatprep.subr.bf16.mxu0 %v5256_v20  ;;  %3259 = vmatprep.subr.bf16.mxu1 %v5259_v21 }
 0x77b   : > { %v2628_v53 = vpop.f32.mrb[16].mxu0  ;;  %v2669_v54 = vpop.f32.mrb[16].mxu1 }
 0x77c   : > { %v2676_v55 = vadd.f32 %v2628_v53, %v2397_v43  ;;  %v2630_v56 = vpop.f32.mrb[17].mxu0  ;;  %v2671_v57 = vpop.f32.mrb[17].mxu1  ;;  %v2678_v2 = vadd.f32 %v2669_v54, %v2399_v1 }
 0x77d   : > { %v2677_v58 = vadd.f32 %v2630_v56, %v2398_v52  ;;  %v2632_v59 = vpop.f32.mrb[18].mxu0  ;;  %v2673_v60 = vpop.f32.mrb[18].mxu1  ;;  %v2679_v4 = vadd.f32 %v2671_v57, %v2400_v3  ;;  %v2710_v56 = vld [vmem:[#allocation3 + $0xa8] sm:$0xff] }
 0x77e   : > { %v4039_v61 = vmul.f32 -1.442695, %v2676_v55  ;;  %v2633_v62 = vpop.f32.mrb[19].mxu0  ;;  %v2674_v63 = vpop.f32.mrb[19].mxu1  ;;  %v4041_v5 = vmul.f32 -1.442695, %v2678_v2 }
 0x77f   : > { %v4040_v0 = vmul.f32 -1.442695, %v2677_v58 }
 0x780   : > { %4460 = vpow2.f32 %v4039_v61 }
 0x781   : > { %4462 = vpow2.f32 %v4040_v0 }
 0x782   : > { %4464 = vtanh.f32 %v2679_v4 }
 0x783   : > { %4466 = vpow2.f32 %v4041_v5  ;;  %v2711_v5 = vld [vmem:[#allocation3 + $0xb0] sm:$0xff] }
 0x78a   : > { %v4461_v6 = vpop.eup %4460 }
 0x78b   : > { %v2689_v7 = vadd.f32 1.0, %v4461_v6  ;;  %v4463_v8 = vpop.eup %4462  ;;  %v2712_v6 = vld [vmem:[#allocation3 + $0xb8] sm:$0xff] }
 0x78c   : > { %v2690_v16 = vadd.f32 1.0, %v4463_v8  ;;  %v4465_v17 = vpop.eup %4464 }
 0x78d   : > { %4468 = vrcp.f32 %v2689_v7  ;;  %v4467_v18 = vpop.eup %4466 }
 0x78e   : > { %4470 = vrcp.f32 %v2690_v16  ;;  %v2691_v46 = vadd.f32 1.0, %v4467_v18 }
 0x790   : > { %4472 = vrcp.f32 %v2691_v46 }
 0x797   : > { %v4469_v19 = vpop.eup %4468 }
 0x798   : > { %v2700_v44 = vmul.f32 %v4469_v19, %v4465_v17  ;;  %v4471_v45 = vpop.eup %4470 }
 0x799   : > { %v2699_v47 = vmul.f32 %v4471_v45, %v5386_v51  ;;  %v2709_v51 = vld [vmem:[#allocation3 + $0xa0] sm:$0xff] }
 0x79a   : > { %v4473_v52 = vpop.eup %4472 }
 0x79b   : > { %v5424_v43 = vadd.f32 %v2700_v44, %v2699_v47 }
 0x79d   : > { %4474 = vtanh.f32 %v5424_v43 }
 0x7a7   : > { %v4475_v53 = vpop.eup %4474 }
 0x7a8   : > { %v2703_v54 = vmul.f32 %v4475_v53, %v4473_v52 }
 0x7aa   : > { %2705 = vst [vmem:[#allocation2 + $0x20] sm:$0xff] %v2703_v54  ;;  %v2713_v55 = vpack.c.bf16 %v2703_v54, %v2703_v54 }
 0x7ac   : > { %2939 = vmatmul.mubr.bf16.vlgmr.msra.gmra.mrb[20].mxu0 %v2713_v55  ;;  %2980 = vmatmul.mubr.bf16.vlgmr.msra.gmra.mrb[20].mxu1 %v2713_v55 }
 0x7ad   : > { %3219 = vmatpush1.bf16.msra.mxu0 %v5262_v22  ;;  %3260 = vmatpush1.bf16.msra.mxu1 %v5265_v23 }
 0x7ae   : > { %3220 = vmatprep.subr.bf16.mxu0 %v5272_v24  ;;  %3261 = vmatprep.subr.bf16.mxu1 %v5275_v25 }
 0x7af   : > { %3250 = vmatprep.mubr.bf16.mxu0 %v4630_v38  ;;  %3291 = vmatprep.mubr.bf16.mxu1 %v4630_v38 }
 0x7b1   : > { %3221 = vmatpush1.bf16.msra.mxu0 %v5278_v26  ;;  %3262 = vmatpush1.bf16.msra.mxu1 %v5281_v27 }
 0x7b2   : > { %3222 = vmatprep.subr.bf16.mxu0 %v5288_v36  ;;  %3263 = vmatprep.subr.bf16.mxu1 %v5291_v28 }
 0x7b5   : > { %3223 = vmatpush1.bf16.msra.mxu0 %v5294_v50  ;;  %3264 = vmatpush1.bf16.msra.mxu1 %v5297_v29 }
 0x7b6   : > { %3224 = vmatprep.subr.bf16.mxu0 %v5304_v30  ;;  %3265 = vmatprep.subr.bf16.mxu1 %v5307_v31 }
 0x7b9   : > { %3225 = vmatpush1.bf16.msra.mxu0 %v5310_v32  ;;  %3266 = vmatpush1.bf16.msra.mxu1 %v5313_v33 }
 0x7ba   : > { %3226 = vmatprep.subr.bf16.mxu0 %v5320_v34  ;;  %3267 = vmatprep.subr.bf16.mxu1 %v5323_v35 }
 0x7bd   : > { %3227 = vmatpush1.bf16.msra.mxu0 %v5326_v40  ;;  %3268 = vmatpush1.bf16.msra.mxu1 %v5329_v41 }
 0x7be   : > { %3228 = vmatprep.subr.bf16.mxu0 %v5339_v9  ;;  %3269 = vmatprep.subr.bf16.mxu1 %v5345_v11 }
 0x7c1   : > { %3229 = vmatpush1.bf16.msra.mxu0 %v5336_v42  ;;  %3270 = vmatpush1.bf16.msra.mxu1 %v5342_v10 }
 0x7c2   : > { %3230 = vmatprep.subr.bf16.mxu0 %v5348_v12  ;;  %3271 = vmatprep.subr.bf16.mxu1 %v5352_v13 }
 0x7c5   : > { %3231 = vmatpush1.bf16.msra.mxu0 %v5358_v14  ;;  %3272 = vmatpush1.bf16.msra.mxu1 %v5361_v15 }
 0x7c6   : > { %3232 = vmatprep.subr.bf16.mxu0 %v5366_v37  ;;  %3273 = vmatprep.subr.bf16.mxu1 %v5369_v39 }
 0x7c9   : > { %3233 = vmatpush1.bf16.msra.mxu0 %v5374_v48  ;;  %3274 = vmatpush1.bf16.msra.mxu1 %v5377_v49 }
 0x7ca   : > { %3530 = vmatprep.subr.bf16.mxu0 %v5256_v20  ;;  %3571 = vmatprep.subr.bf16.mxu1 %v5259_v21 }
 0x87f   : > { %v2940_v57 = vpop.f32.mrb[20].mxu0  ;;  %v2981_v58 = vpop.f32.mrb[20].mxu1 }
 0x880   : > { %v2988_v59 = vadd.f32 %v2940_v57, %v2709_v51  ;;  %v2942_v60 = vpop.f32.mrb[21].mxu0  ;;  %v2983_v61 = vpop.f32.mrb[21].mxu1  ;;  %v2990_v20 = vadd.f32 %v2981_v58, %v2711_v5 }
 0x881   : > { %v2989_v62 = vadd.f32 %v2942_v60, %v2710_v56  ;;  %v2944_v63 = vpop.f32.mrb[22].mxu0  ;;  %v2985_v0 = vpop.f32.mrb[22].mxu1  ;;  %v2991_v21 = vadd.f32 %v2983_v61, %v2712_v6  ;;  %v3333_v61 = vld [vmem:[#allocation3 + $0xe0] sm:$0xff] }
 0x882   : > { %v4074_v1 = vmul.f32 -1.442695, %v2988_v59  ;;  %v2945_v2 = vpop.f32.mrb[23].mxu0  ;;  %v2986_v3 = vpop.f32.mrb[23].mxu1  ;;  %v4076_v7 = vmul.f32 -1.442695, %v2990_v20 }
 0x883   : > { %v4075_v4 = vmul.f32 -1.442695, %v2989_v62  ;;  %v3334_v62 = vld [vmem:[#allocation3 + $0xe8] sm:$0xff] }
 0x884   : > { %4476 = vpow2.f32 %v4074_v1 }
 0x885   : > { %4478 = vpow2.f32 %v4075_v4 }
 0x886   : > { %4480 = vtanh.f32 %v2991_v21 }
 0x887   : > { %4482 = vpow2.f32 %v4076_v7 }
 0x88e   : > { %v4477_v8 = vpop.eup %4476 }
 0x88f   : > { %v3001_v16 = vadd.f32 1.0, %v4477_v8  ;;  %v4479_v17 = vpop.eup %4478 }
 0x890   : > { %v3002_v18 = vadd.f32 1.0, %v4479_v17  ;;  %v4481_v19 = vpop.eup %4480 }
 0x891   : > { %4484 = vrcp.f32 %v3001_v16  ;;  %v4483_v44 = vpop.eup %4482  ;;  %v3335_v16 = vld [vmem:[#allocation3 + $0xf0] sm:$0xff] }
 0x892   : > { %4486 = vrcp.f32 %v3002_v18  ;;  %v3003_v52 = vadd.f32 1.0, %v4483_v44  ;;  %v3336_v18 = vld [vmem:[#allocation3 + $0xf8] sm:$0xff] }
 0x894   : > { %4488 = vrcp.f32 %v3003_v52 }
 0x89b   : > { %v4485_v45 = vpop.eup %4484 }
 0x89c   : > { %v3012_v46 = vmul.f32 %v4485_v45, %v4481_v19  ;;  %v4487_v47 = vpop.eup %4486 }
 0x89d   : > { %v3011_v53 = vmul.f32 %v4487_v47, %v5424_v43 }
 0x89e   : > { %v4489_v55 = vpop.eup %4488 }
 0x89f   : > { %v5462_v54 = vadd.f32 %v3012_v46, %v3011_v53 }
 0x8a1   : > { %4490 = vtanh.f32 %v5462_v54 }
 0x8ab   : > { %v4491_v51 = vpop.eup %4490 }
 0x8ac   : > { %v3015_v56 = vmul.f32 %v4491_v51, %v4489_v55 }
 0x8ae   : > { %3017 = vst [vmem:[#allocation2 + $0x28] sm:$0xff] %v3015_v56  ;;  %v3025_v57 = vpack.c.bf16 %v3015_v56, %v3015_v56 }
 0x8b0   : > { %3251 = vmatmul.mubr.bf16.vlgmr.msra.gmra.mrb[24].mxu0 %v3025_v57  ;;  %3292 = vmatmul.mubr.bf16.vlgmr.msra.gmra.mrb[24].mxu1 %v3025_v57 }
 0x8b1   : > { %3531 = vmatpush1.bf16.msra.mxu0 %v5262_v22  ;;  %3572 = vmatpush1.bf16.msra.mxu1 %v5265_v23  ;;  %v3022_v22 = vld [vmem:[#allocation3 + $0xc8] sm:$0xff] }
 0x8b2   : > { %3532 = vmatprep.subr.bf16.mxu0 %v5272_v24  ;;  %3573 = vmatprep.subr.bf16.mxu1 %v5275_v25 }
 0x8b3   : > { %3562 = vmatprep.mubr.bf16.mxu0 %v4630_v38  ;;  %3603 = vmatprep.mubr.bf16.mxu1 %v4630_v38  ;;  %v3021_v38 = vld [vmem:[#allocation3 + $0xc0] sm:$0xff] }
 0x8b5   : > { %3533 = vmatpush1.bf16.msra.mxu0 %v5278_v26  ;;  %3574 = vmatpush1.bf16.msra.mxu1 %v5281_v27 }
 0x8b6   : > { %3534 = vmatprep.subr.bf16.mxu0 %v5288_v36  ;;  %3575 = vmatprep.subr.bf16.mxu1 %v5291_v28 }
 0x8b9   : > { %3535 = vmatpush1.bf16.msra.mxu0 %v5294_v50  ;;  %3576 = vmatpush1.bf16.msra.mxu1 %v5297_v29 }
 0x8ba   : > { %3536 = vmatprep.subr.bf16.mxu0 %v5304_v30  ;;  %3577 = vmatprep.subr.bf16.mxu1 %v5307_v31 }
 0x8bd   : > { %3537 = vmatpush1.bf16.msra.mxu0 %v5310_v32  ;;  %3578 = vmatpush1.bf16.msra.mxu1 %v5313_v33  ;;  %v3023_v33 = vld [vmem:[#allocation3 + $0xd0] sm:$0xff] }
 0x8be   : > { %3538 = vmatprep.subr.bf16.mxu0 %v5320_v34  ;;  %3579 = vmatprep.subr.bf16.mxu1 %v5323_v35  ;;  %v3024_v35 = vld [vmem:[#allocation3 + $0xd8] sm:$0xff] }
 0x8c1   : > { %3539 = vmatpush1.bf16.msra.mxu0 %v5326_v40  ;;  %3580 = vmatpush1.bf16.msra.mxu1 %v5329_v41 }
 0x8c2   : > { %3540 = vmatprep.subr.bf16.mxu0 %v5339_v9  ;;  %3581 = vmatprep.subr.bf16.mxu1 %v5345_v11 }
 0x8c5   : > { %3541 = vmatpush1.bf16.msra.mxu0 %v5336_v42  ;;  %3582 = vmatpush1.bf16.msra.mxu1 %v5342_v10 }
 0x8c6   : > { %3542 = vmatprep.subr.bf16.mxu0 %v5348_v12  ;;  %3583 = vmatprep.subr.bf16.mxu1 %v5352_v13 }
 0x8c9   : > { %3543 = vmatpush1.bf16.msra.mxu0 %v5358_v14  ;;  %3584 = vmatpush1.bf16.msra.mxu1 %v5361_v15 }
 0x8ca   : > { %3544 = vmatprep.subr.bf16.mxu0 %v5366_v37  ;;  %3585 = vmatprep.subr.bf16.mxu1 %v5369_v39 }
 0x8cd   : > { %3545 = vmatpush1.bf16.msra.mxu0 %v5374_v48  ;;  %3586 = vmatpush1.bf16.msra.mxu1 %v5377_v49 }
 0x983   : > { %v3252_v23 = vpop.f32.mrb[24].mxu0  ;;  %v3293_v24 = vpop.f32.mrb[24].mxu1 }
 0x984   : > { %v3300_v25 = vadd.f32 %v3252_v23, %v3021_v38  ;;  %v3254_v26 = vpop.f32.mrb[25].mxu0  ;;  %v3295_v27 = vpop.f32.mrb[25].mxu1  ;;  %v3302_v34 = vadd.f32 %v3293_v24, %v3023_v33 }
 0x985   : > { %v3301_v36 = vadd.f32 %v3254_v26, %v3022_v22  ;;  %v3256_v28 = vpop.f32.mrb[26].mxu0  ;;  %v3297_v50 = vpop.f32.mrb[26].mxu1  ;;  %v3303_v40 = vadd.f32 %v3295_v27, %v3024_v35 }
 0x986   : > { %v4109_v29 = vmul.f32 -1.442695, %v3300_v25  ;;  %v3257_v30 = vpop.f32.mrb[27].mxu0  ;;  %v3298_v31 = vpop.f32.mrb[27].mxu1  ;;  %v4111_v41 = vmul.f32 -1.442695, %v3302_v34 }
 0x987   : > { %v4110_v32 = vmul.f32 -1.442695, %v3301_v36 }
 0x988   : > { %4492 = vpow2.f32 %v4109_v29 }
 0x989   : > { %4494 = vpow2.f32 %v4110_v32 }
 0x98a   : > { %4496 = vtanh.f32 %v3303_v40 }
 0x98b   : > { %4498 = vpow2.f32 %v4111_v41 }
 0x992   : > { %v4493_v42 = vpop.eup %4492 }
 0x993   : > { %v3313_v9 = vadd.f32 1.0, %v4493_v42  ;;  %v4495_v10 = vpop.eup %4494 }
 0x994   : > { %v3314_v11 = vadd.f32 1.0, %v4495_v10  ;;  %v4497_v12 = vpop.eup %4496 }
 0x995   : > { %4500 = vrcp.f32 %v3313_v9  ;;  %v4499_v13 = vpop.eup %4498 }
 0x996   : > { %4502 = vrcp.f32 %v3314_v11  ;;  %v3315_v39 = vadd.f32 1.0, %v4499_v13 }
 0x998   : > { %4504 = vrcp.f32 %v3315_v39 }
 0x99f   : > { %v4501_v14 = vpop.eup %4500 }
 0x9a0   : > { %v3324_v15 = vmul.f32 %v4501_v14, %v4497_v12  ;;  %v4503_v37 = vpop.eup %4502 }
 0x9a1   : > { %v3323_v48 = vmul.f32 %v4503_v37, %v5462_v54 }
 0x9a2   : > { %v4505_v43 = vpop.eup %4504 }
 0x9a3   : > { %v3325_v49 = vadd.f32 %v3324_v15, %v3323_v48 }
 0x9a5   : > { %4506 = vtanh.f32 %v3325_v49 }
 0x9af   : > { %v4507_v58 = vpop.eup %4506 }
 0x9b0   : > { %v3327_v59 = vmul.f32 %v4507_v58, %v4505_v43 }
 0x9b2   : > { %3329 = vst [vmem:[#allocation2 + $0x30] sm:$0xff] %v3327_v59  ;;  %v3337_v60 = vpack.c.bf16 %v3327_v59, %v3327_v59 }
 0x9b4   : > { %3563 = vmatmul.mubr.bf16.vlgmr.msra.gmra.mrb[28].mxu0 %v3337_v60  ;;  %3604 = vmatmul.mubr.bf16.vlgmr.msra.gmra.mrb[28].mxu1 %v3337_v60 }
 0xa87   : > { %v3564_v63 = vpop.f32.mrb[28].mxu0  ;;  %v3605_v0 = vpop.f32.mrb[28].mxu1 }
 0xa88   : > { %v3612_v1 = vadd.f32 %v3564_v63, %v3333_v61  ;;  %v3566_v2 = vpop.f32.mrb[29].mxu0  ;;  %v3607_v3 = vpop.f32.mrb[29].mxu1  ;;  %v3614_v17 = vadd.f32 %v3605_v0, %v3335_v16 }
 0xa89   : > { %v3613_v4 = vadd.f32 %v3566_v2, %v3334_v62  ;;  %v3568_v5 = vpop.f32.mrb[30].mxu0  ;;  %v3609_v20 = vpop.f32.mrb[30].mxu1  ;;  %v3615_v19 = vadd.f32 %v3607_v3, %v3336_v18 }
 0xa8a   : > { %v4144_v6 = vmul.f32 -1.442695, %v3612_v1  ;;  %v3569_v21 = vpop.f32.mrb[31].mxu0  ;;  %v3610_v7 = vpop.f32.mrb[31].mxu1  ;;  %v4146_v44 = vmul.f32 -1.442695, %v3614_v17 }
 0xa8b   : > { %v4145_v8 = vmul.f32 -1.442695, %v3613_v4 }
 0xa8c   : > { %4508 = vpow2.f32 %v4144_v6 }
 0xa8d   : > { %4510 = vpow2.f32 %v4145_v8 }
 0xa8e   : > { %4512 = vtanh.f32 %v3615_v19 }
 0xa8f   : > { %4514 = vpow2.f32 %v4146_v44 }
 0xa96   : > { %v4509_v45 = vpop.eup %4508 }
 0xa97   : > { %v3625_v46 = vadd.f32 1.0, %v4509_v45  ;;  %v4511_v47 = vpop.eup %4510 }
 0xa98   : > { %v3626_v52 = vadd.f32 1.0, %v4511_v47  ;;  %v4513_v53 = vpop.eup %4512 }
 0xa99   : > { %4516 = vrcp.f32 %v3625_v46  ;;  %v4515_v54 = vpop.eup %4514 }
 0xa9a   : > { %4518 = vrcp.f32 %v3626_v52  ;;  %v3627_v57 = vadd.f32 1.0, %v4515_v54 }
 0xa9c   : > { %4520 = vrcp.f32 %v3627_v57 }
 0xaa3   : > { %v4517_v55 = vpop.eup %4516 }
 0xaa4   : > { %v3636_v51 = vmul.f32 %v4517_v55, %v4513_v53  ;;  %v4519_v56 = vpop.eup %4518 }
 0xaa5   : > { %v3635_v38 = vmul.f32 %v4519_v56, %v3325_v49 }
 0xaa6   : > { %v4521_v23 = vpop.eup %4520 }
 0xaa7   : > { %v3637_v22 = vadd.f32 %v3636_v51, %v3635_v38 }
 0xaa9   : > { %4522 = vtanh.f32 %v3637_v22  ;;  %3643 = vst [vmem:[%s4830_s27] sm:$0xff] %v3637_v22 }
 0xab3   : > { %v4523_v24 = vpop.eup %4522 }
 0xab4   : > { %v3639_v25 = vmul.f32 %v4523_v24, %v4521_v23 }
 0xab6   : > { %3641 = vst [vmem:[#allocation2 + $0x38] sm:$0xff] %v3639_v25  ;;  %3642 = vst [vmem:[%s4825_s6] sm:$0xff] %v3639_v25 }
 0xab7 PF: > { %p19_p6 = scmp.ge.s32.totalorder %s4683_s23, 4   ;;  %s5525_s18 = smov %s4614_s19 }
 0xab8   : > { %s5526_s19 = smov %s4618_s20  ;;  %s5527_s20 = smov %s4693_s26 }
 0xab9   : > { %s5528_s21 = smov %s4683_s23  ;;  %21 = sbr.rel (!%p19_p6) target bundleno = 5 (0x5), region = 127 }
 0xac0   :  { %3677 = vsyncpa [#allocation5], 1 }
 0xac1   :  { %3679 = vsyncpa [#allocation5 + $0x1], 1 }
 0xac2   :  { %3680 = vsyncpa [#allocation7], 1 }
 0xac3   :  { %3682 = vsyncpa [#allocation7 + $0x1], 1 }

</bundles_post_ra>
